<compile_context>
chip_gen: v6e
topology: v6e:2x2x1
jax: 0.10.0
libtpu: 0.0.40
codegen_flags: <defaults>
</compile_context>

<pallas_src>
import jax
import jax.numpy as jnp
from jax.experimental import pallas as pl
from jax.experimental.pallas import tpu as pltpu

IN_FEATURES = 28 * 28   # 784
HIDDEN = 512
OUT_FEATURES = 10
OUT_PAD = 128           # lane-dense padded output width


def mlp_kernel(x_ref, w1_ref, b1_ref, w2_ref, b2_ref, w3_ref, b3_ref, o_ref):
    # Layer 1: (TB, 784) @ (784, 512) + (1, 512) -> ReLU   (bf16 MXU inputs, f32 acc)
    h1 = jnp.dot(x_ref[...], w1_ref[...], preferred_element_type=jnp.float32)
    h1 = jnp.maximum(h1 + b1_ref[...], 0.0)
    # Layer 2: (TB, 512) @ (512, 512) + (1, 512) -> ReLU
    h2 = jnp.dot(h1.astype(w2_ref.dtype), w2_ref[...], preferred_element_type=jnp.float32)
    h2 = jnp.maximum(h2 + b2_ref[...], 0.0)
    # Layer 3: (TB, 512) @ (512, 128 padded) + (1, 128 padded)  -> unmasked lane-dense store
    logits = jnp.dot(h2.astype(w3_ref.dtype), w3_ref[...], preferred_element_type=jnp.float32)
    o_ref[...] = (logits + b3_ref[...]).astype(o_ref.dtype)


def _round_up(n, m):
    return (n + m - 1) // m * m


@jax.jit
def simple_neural_network(x, params):
    """x: (B, 1, 28, 28) float32 NCHW (MNIST-like). Returns logits (B, 10) float32."""
    w1, b1, w2, b2, w3, b3 = params
    B = x.shape[0]
    x_flat = x.reshape(B, -1).astype(jnp.bfloat16)          # nn.Flatten(): (B, 784)

    # Batch tile: 256 rows (fills MXU height on v6e/v7x) once B is large,
    # otherwise just round the tiny batch up to the sublane multiple of 8.
    TB = 256 if B >= 256 else _round_up(B, 8)
    B_pad = _round_up(B, TB)
    if B_pad != B:
        x_flat = jnp.pad(x_flat, ((0, B_pad - B), (0, 0)))

    # bf16 weights (halve HBM->VMEM traffic, native MXU width); biases stay f32.
    w1b = w1.astype(jnp.bfloat16)
    w2b = w2.astype(jnp.bfloat16)
    # Zero-pad the final layer from 10 -> 128 output lanes.
    w3b = jnp.pad(w3, ((0, 0), (0, OUT_PAD - OUT_FEATURES))).astype(jnp.bfloat16)
    b3p = jnp.pad(b3, ((0, 0), (0, OUT_PAD - OUT_FEATURES)))

    # Constant index maps -> weight/bias blocks stay VMEM-resident across batch tiles.
    const = lambda shape: pl.BlockSpec(shape, lambda i: (0,) * len(shape))

    out = pl.pallas_call(
        mlp_kernel,
        out_shape=jax.ShapeDtypeStruct((B_pad, OUT_PAD), jnp.float32),
        grid=(B_pad // TB,),
        in_specs=[
            pl.BlockSpec((TB, IN_FEATURES), lambda i: (i, 0)),   # x walks the batch
            const(w1b.shape), const(b1.shape),
            const(w2b.shape), const(b2.shape),
            const(w3b.shape), const(b3p.shape),
        ],
        out_specs=pl.BlockSpec((TB, OUT_PAD), lambda i: (i, 0)),
        compiler_params=pltpu.CompilerParams(
            dimension_semantics=("parallel",),   # megacore-shardable batch axis (v7x)
            vmem_limit_bytes=32 << 20,           # v7x-safe, ample for ~2.5 MB footprint
        ),
    )(x_flat, w1b, b1, w2b, b2, w3b, b3p)

    return out[:B, :OUT_FEATURES]
    # TODO(synk): for serving workloads, keep bf16 weights VMEM-resident across
    # pallas_calls (P10 cross-call prefetch) instead of re-DMA'ing ~1.4 MB per call.


def init_params(key):
    """Deterministic init mimicking nn.Linear's U(-1/sqrt(fan_in), 1/sqrt(fan_in))."""
    def linear(key, fan_in, fan_out):
        kw, kb = jax.random.split(key)
        bound = 1.0 / jnp.sqrt(fan_in)
        # stored as (in, out) so the kernel computes x @ W  (== x @ W_pt.T in PyTorch)
        w = jax.random.uniform(kw, (fan_in, fan_out), jnp.float32, -bound, bound)
        b = jax.random.uniform(kb, (1, fan_out), jnp.float32, -bound, bound)
        return w, b

    k1, k2, k3 = jax.random.split(key, 3)
    w1, b1 = linear(k1, IN_FEATURES, HIDDEN)
    w2, b2 = linear(k2, HIDDEN, HIDDEN)
    w3, b3 = linear(k3, HIDDEN, OUT_FEATURES)
    return (w1, b1, w2, b2, w3, b3)


def reference_forward_bf16(x, params):
    """Plain-JAX reference matching the kernel's bf16-input / f32-accumulate numerics."""
    w1, b1, w2, b2, w3, b3 = params
    h = x.reshape(x.shape[0], -1).astype(jnp.bfloat16)
    h = jnp.maximum(jnp.dot(h, w1.astype(jnp.bfloat16),
                            preferred_element_type=jnp.float32) + b1, 0.0)
    h = jnp.maximum(jnp.dot(h.astype(jnp.bfloat16), w2.astype(jnp.bfloat16),
                            preferred_element_type=jnp.float32) + b2, 0.0)
    return jnp.dot(h.astype(jnp.bfloat16), w3.astype(jnp.bfloat16),
                   preferred_element_type=jnp.float32) + b3


def reference_forward_f32(x, params):
    w1, b1, w2, b2, w3, b3 = params
    h = x.reshape(x.shape[0], -1)
    h = jnp.maximum(h @ w1 + b1, 0.0)
    h = jnp.maximum(h @ w2 + b2, 0.0)
    return h @ w3 + b3


if __name__ == "__main__":
    key = jax.random.PRNGKey(0)
    kx, kp = jax.random.split(key)
    B = 4
    x = jax.random.normal(kx, (B, 1, 28, 28), jnp.float32)  # NCHW, MNIST-like
    params = init_params(kp)

    logits = simple_neural_network(x, params)
    logits = jax.block_until_ready(logits)
    assert logits.shape == (B, OUT_FEATURES)

    # Tight check vs. a numerics-matched (bf16-input, f32-accumulate) reference.
    ref_bf16 = reference_forward_bf16(x, params)
    assert jnp.allclose(logits, ref_bf16, atol=1e-2, rtol=1e-2)
    # Loose sanity check vs. the full-f32 PyTorch-equivalent forward.
    ref_f32 = reference_forward_f32(x, params)
    assert jnp.allclose(logits, ref_f32, atol=1e-1, rtol=1e-1)

    print("KERNEL_OK")
</pallas_src>

<mosaic_0001>
module attributes {stable_mosaic.version = 11 : i64} {
  func.func @mlp_kernel(%arg0: i32, %arg1: memref<8x784xbf16, #tpu.memory_space<vmem>>, %arg2: memref<784x512xbf16, #tpu.memory_space<vmem>>, %arg3: memref<1x512xf32, #tpu.memory_space<vmem>>, %arg4: memref<512x512xbf16, #tpu.memory_space<vmem>>, %arg5: memref<1x512xf32, #tpu.memory_space<vmem>>, %arg6: memref<512x128xbf16, #tpu.memory_space<vmem>>, %arg7: memref<1x128xf32, #tpu.memory_space<vmem>>, %arg8: memref<8x128xf32, #tpu.memory_space<vmem>>) attributes {dimension_semantics = [#tpu.dimension_semantics<parallel>], iteration_bounds = array<i64: 1>, scalar_prefetch = 0 : i64, scratch_operands = 0 : i64, tpu.core_type = #tpu.core_type<tc>, window_params = [{transform_indices = @transform_0, window_bounds = array<i64: 8, 784>}, {pipeline_mode = #tpu.pipeline_mode<synchronous>, transform_indices = @transform_1, window_bounds = array<i64: 784, 512>}, {pipeline_mode = #tpu.pipeline_mode<synchronous>, transform_indices = @transform_2, window_bounds = array<i64: 1, 512>}, {pipeline_mode = #tpu.pipeline_mode<synchronous>, transform_indices = @transform_3, window_bounds = array<i64: 512, 512>}, {pipeline_mode = #tpu.pipeline_mode<synchronous>, transform_indices = @transform_4, window_bounds = array<i64: 1, 512>}, {pipeline_mode = #tpu.pipeline_mode<synchronous>, transform_indices = @transform_5, window_bounds = array<i64: 512, 128>}, {pipeline_mode = #tpu.pipeline_mode<synchronous>, transform_indices = @transform_6, window_bounds = array<i64: 1, 128>}, {transform_indices = @transform_7, window_bounds = array<i64: 8, 128>}]} {
    %c0 = arith.constant 0 : index
    %c0_0 = arith.constant 0 : index
    %0 = vector.load %arg1[%c0, %c0_0] : memref<8x784xbf16, #tpu.memory_space<vmem>>, vector<8x784xbf16>
    %c0_1 = arith.constant 0 : index
    %c0_2 = arith.constant 0 : index
    %1 = vector.load %arg2[%c0_1, %c0_2] : memref<784x512xbf16, #tpu.memory_space<vmem>>, vector<784x512xbf16>
    %cst = arith.constant dense<0.000000e+00> : vector<8x512xf32>
    %2 = tpu.matmul %0, %1, %cst {dimension_numbers = #tpu.dot_dimension_numbers<[1], [0], [0], [1], [0, 0, 1, 1], [], []>} : vector<8x784xbf16>, vector<784x512xbf16>, vector<8x512xf32> -> vector<8x512xf32>
    %c0_3 = arith.constant 0 : index
    %c0_4 = arith.constant 0 : index
    %3 = vector.load %arg3[%c0_3, %c0_4] : memref<1x512xf32, #tpu.memory_space<vmem>>, vector<1x512xf32>
    %4 = vector.broadcast %3 : vector<1x512xf32> to vector<8x512xf32>
    %5 = arith.addf %2, %4 : vector<8x512xf32>
    %cst_5 = arith.constant 0.000000e+00 : f32
    %6 = vector.broadcast %cst_5 : f32 to vector<8x512xf32>
    %7 = arith.maximumf %5, %6 : vector<8x512xf32>
    %8 = arith.truncf %7 : vector<8x512xf32> to vector<8x512xbf16>
    %c0_6 = arith.constant 0 : index
    %c0_7 = arith.constant 0 : index
    %9 = vector.load %arg4[%c0_6, %c0_7] : memref<512x512xbf16, #tpu.memory_space<vmem>>, vector<512x512xbf16>
    %cst_8 = arith.constant dense<0.000000e+00> : vector<8x512xf32>
    %10 = tpu.matmul %8, %9, %cst_8 {dimension_numbers = #tpu.dot_dimension_numbers<[1], [0], [0], [1], [0, 0, 1, 1], [], []>} : vector<8x512xbf16>, vector<512x512xbf16>, vector<8x512xf32> -> vector<8x512xf32>
    %c0_9 = arith.constant 0 : index
    %c0_10 = arith.constant 0 : index
    %11 = vector.load %arg5[%c0_9, %c0_10] : memref<1x512xf32, #tpu.memory_space<vmem>>, vector<1x512xf32>
    %12 = vector.broadcast %11 : vector<1x512xf32> to vector<8x512xf32>
    %13 = arith.addf %10, %12 : vector<8x512xf32>
    %cst_11 = arith.constant 0.000000e+00 : f32
    %14 = vector.broadcast %cst_11 : f32 to vector<8x512xf32>
    %15 = arith.maximumf %13, %14 : vector<8x512xf32>
    %16 = arith.truncf %15 : vector<8x512xf32> to vector<8x512xbf16>
    %c0_12 = arith.constant 0 : index
    %c0_13 = arith.constant 0 : index
    %17 = vector.load %arg6[%c0_12, %c0_13] : memref<512x128xbf16, #tpu.memory_space<vmem>>, vector<512x128xbf16>
    %cst_14 = arith.constant dense<0.000000e+00> : vector<8x128xf32>
    %18 = tpu.matmul %16, %17, %cst_14 {dimension_numbers = #tpu.dot_dimension_numbers<[1], [0], [0], [1], [0, 0, 1, 1], [], []>} : vector<8x512xbf16>, vector<512x128xbf16>, vector<8x128xf32> -> vector<8x128xf32>
    %c0_15 = arith.constant 0 : index
    %c0_16 = arith.constant 0 : index
    %19 = vector.load %arg7[%c0_15, %c0_16] : memref<1x128xf32, #tpu.memory_space<vmem>>, vector<1x128xf32>
    %20 = vector.broadcast %19 : vector<1x128xf32> to vector<8x128xf32>
    %21 = arith.addf %18, %20 : vector<8x128xf32>
    %c0_17 = arith.constant 0 : index
    %c0_18 = arith.constant 0 : index
    %22 = vector.load %arg8[%c0_17, %c0_18] : memref<8x128xf32, #tpu.memory_space<vmem>>, vector<8x128xf32>
    tpu.vector_store %arg8[%c0_17, %c0_18], %21 {strides = array<i32>} : memref<8x128xf32, #tpu.memory_space<vmem>>, vector<8x128xf32>,
    return
  }
  func.func @transform_0(%arg0: i32) -> (i32, i32) {
    %c0_i32 = arith.constant 0 : i32
    %c0_i32_0 = arith.constant 0 : i32
    return %arg0, %c0_i32 : i32, i32
  }
  func.func @transform_1(%arg0: i32) -> (i32, i32) {
    %c0_i32 = arith.constant 0 : i32
    %c0_i32_0 = arith.constant 0 : i32
    %c0_i32_1 = arith.constant 0 : i32
    return %c0_i32, %c0_i32_0 : i32, i32
  }
  func.func @transform_2(%arg0: i32) -> (i32, i32) {
    %c0_i32 = arith.constant 0 : i32
    %c0_i32_0 = arith.constant 0 : i32
    %c0_i32_1 = arith.constant 0 : i32
    return %c0_i32, %c0_i32_0 : i32, i32
  }
  func.func @transform_3(%arg0: i32) -> (i32, i32) {
    %c0_i32 = arith.constant 0 : i32
    %c0_i32_0 = arith.constant 0 : i32
    %c0_i32_1 = arith.constant 0 : i32
    return %c0_i32, %c0_i32_0 : i32, i32
  }
  func.func @transform_4(%arg0: i32) -> (i32, i32) {
    %c0_i32 = arith.constant 0 : i32
    %c0_i32_0 = arith.constant 0 : i32
    %c0_i32_1 = arith.constant 0 : i32
    return %c0_i32, %c0_i32_0 : i32, i32
  }
  func.func @transform_5(%arg0: i32) -> (i32, i32) {
    %c0_i32 = arith.constant 0 : i32
    %c0_i32_0 = arith.constant 0 : i32
    %c0_i32_1 = arith.constant 0 : i32
    return %c0_i32, %c0_i32_0 : i32, i32
  }
  func.func @transform_6(%arg0: i32) -> (i32, i32) {
    %c0_i32 = arith.constant 0 : i32
    %c0_i32_0 = arith.constant 0 : i32
    %c0_i32_1 = arith.constant 0 : i32
    return %c0_i32, %c0_i32_0 : i32, i32
  }
  func.func @transform_7(%arg0: i32) -> (i32, i32) {
    %c0_i32 = arith.constant 0 : i32
    %c0_i32_0 = arith.constant 0 : i32
    return %arg0, %c0_i32 : i32, i32
  }
}

</mosaic_0001>

<bundles_post_ra>
// kernel: simple_neural_network.1
= control target key start
LH: loop header
LB: loop body
LE: loop exit
PB: predicated region body
PF: predicated region fallthrough
CT: control target
= control target key end

     0   :  { %vm1253_vm0 = vcmask 130048   ;;  %s5052_s1 = inlined_call_operand.vmem [shape: bf16[784,512], index: 1, kind: input, shape index: {}]   ;;  %s5053_s0 = inlined_call_operand.vmem [shape: bf16[8,784], index: 0, kind: input, shape index: {}]   ;;  %s5054_s3 = inlined_call_operand.vmem [shape: bf16[512,512], index: 3, kind: input, shape index: {}]   ;;  %s5055_s2 = inlined_call_operand.vmem [shape: f32[1,512], index: 2, kind: input, shape index: {}]   ;;  %s5056_s5 = inlined_call_operand.vmem [shape: bf16[512,128], index: 5, kind: input, shape index: {}]   ;;  %s5057_s4 = inlined_call_operand.vmem [shape: f32[1,512], index: 4, kind: input, shape index: {}]   ;;  %s5058_s6 = inlined_call_operand.vmem [shape: f32[1,128], index: 6, kind: input, shape index: {}]   ;;  %s5059_s7 = inlined_call_operand.vmem [shape: f32[8,128], index: 7, kind: output, shape index: {}]  }
   0x1   :  { %v3314_v0 = vld [vmem:[%s5052_s1 + $0xe4] ss:$16 sps:$4 sm:$0xff]   ;;  %v3318_v2 = vld [vmem:[%s5052_s1 + $0xe0] ss:$16 sps:$4 sm:$0xff]   ;;  %v28_v50 = vld [vmem:[%s5053_s0 + $0x8] sm:$0xff] }
   0x2   :  { %v3316_v1 = vld [vmem:[%s5052_s1 + $0x2e4] ss:$16 sps:$4 sm:$0xff]   ;;  %1257 = vmatprep.subr.bf16.mxu0 %v3314_v0  ;;  %v3319_v3 = vld [vmem:[%s5052_s1 + $0x2e0] ss:$16 sps:$4 sm:$0xff]   ;;  %v4035_v52 = vcombine.high %v28_v50, %v28_v50 }
   0x3   :  { %1298 = vmatprep.subr.bf16.mxu1 %v3316_v1  ;;  %v3320_v4 = vld [vmem:[%s5052_s1 + $0xc4] ss:$16 sps:$4 sm:$0xff]   ;;  %1258 = vmatpush1.bf16.msra.mxu0 %v3318_v2  ;;  %v3324_v6 = vld [vmem:[%s5052_s1 + $0xc0] ss:$16 sps:$4 sm:$0xff]  }
   0x4   :  { %1299 = vmatpush1.bf16.msra.mxu1 %v3319_v3  ;;  %v3322_v5 = vld [vmem:[%s5052_s1 + $0x2c4] ss:$16 sps:$4 sm:$0xff]   ;;  %1259 = vmatprep.subr.bf16.mxu0 %v3320_v4  ;;  %v3325_v7 = vld [vmem:[%s5052_s1 + $0x2c0] ss:$16 sps:$4 sm:$0xff]  }
   0x5   :  { %1300 = vmatprep.subr.bf16.mxu1 %v3322_v5  ;;  %v3326_v8 = vld [vmem:[%s5052_s1 + $0xa4] ss:$16 sps:$4 sm:$0xff]   ;;  %v3330_v10 = vld [vmem:[%s5052_s1 + $0xa0] ss:$16 sps:$4 sm:$0xff]   ;;  %1330 = vmatprep.mubr.bf16.mxu1 %v4035_v52 }
   0x6   :  { %v3328_v9 = vld [vmem:[%s5052_s1 + $0x2a4] ss:$16 sps:$4 sm:$0xff]   ;;  %v3331_v11 = vld [vmem:[%s5052_s1 + $0x2a0] ss:$16 sps:$4 sm:$0xff]  }
   0x7   :  { %1260 = vmatpush1.bf16.msra.mxu0 %v3324_v6  ;;  %v3332_v12 = vld [vmem:[%s5052_s1 + $0x84] ss:$16 sps:$4 sm:$0xff]   ;;  %v3336_v14 = vld [vmem:[%s5052_s1 + $0x80] ss:$16 sps:$4 sm:$0xff]  }
   0x8   :  { %1301 = vmatpush1.bf16.msra.mxu1 %v3325_v7  ;;  %1261 = vmatprep.subr.bf16.mxu0 %v3326_v8  ;;  %v3334_v13 = vld [vmem:[%s5052_s1 + $0x284] ss:$16 sps:$4 sm:$0xff]   ;;  %v3337_v15 = vld [vmem:[%s5052_s1 + $0x280] ss:$16 sps:$4 sm:$0xff]   ;;  %v4092_v7 = vcombine.low %v28_v50, %v28_v50  ;;  %v3472_v50 = vld [vmem:[%s5052_s1 + $0x1e8] ss:$16 sps:$4 sm:$0xff]  }
   0x9   :  { %1302 = vmatprep.subr.bf16.mxu1 %v3328_v9  ;;  %v3338_v16 = vld [vmem:[%s5052_s1 + $0x64] ss:$16 sps:$4 sm:$0xff]   ;;  %v3342_v18 = vld [vmem:[%s5052_s1 + $0x60] ss:$16 sps:$4 sm:$0xff]  }
   0xa   :  { %v3340_v17 = vld [vmem:[%s5052_s1 + $0x264] ss:$16 sps:$4 sm:$0xff]   ;;  %v3343_v19 = vld [vmem:[%s5052_s1 + $0x260] ss:$16 sps:$4 sm:$0xff]  }
   0xb   :  { %1262 = vmatpush1.bf16.msra.mxu0 %v3330_v10  ;;  %v3344_v20 = vld [vmem:[%s5052_s1 + $0x44] ss:$16 sps:$4 sm:$0xff]   ;;  %v3348_v22 = vld [vmem:[%s5052_s1 + $0x40] ss:$16 sps:$4 sm:$0xff]  }
   0xc   :  { %1303 = vmatpush1.bf16.msra.mxu1 %v3331_v11  ;;  %1263 = vmatprep.subr.bf16.mxu0 %v3332_v12  ;;  %v3346_v21 = vld [vmem:[%s5052_s1 + $0x244] ss:$16 sps:$4 sm:$0xff]   ;;  %v3349_v23 = vld [vmem:[%s5052_s1 + $0x240] ss:$16 sps:$4 sm:$0xff]   ;;  %v3426_v11 = vld [vmem:[%s5052_s1 + $0xec] ss:$16 sps:$4 sm:$0xff]  }
   0xd   :  { %1304 = vmatprep.subr.bf16.mxu1 %v3334_v13  ;;  %v3350_v24 = vld [vmem:[%s5052_s1 + $0x24] ss:$16 sps:$4 sm:$0xff]   ;;  %v3354_v26 = vld [vmem:[%s5052_s1 + $0x20] ss:$16 sps:$4 sm:$0xff]   ;;  %v3839_v13 = vmov 0  }
   0xe   :  { %v3352_v25 = vld [vmem:[%s5052_s1 + $0x224] ss:$16 sps:$4 sm:$0xff]   ;;  %v3355_v27 = vld [vmem:[%s5052_s1 + $0x220] ss:$16 sps:$4 sm:$0xff]  }
   0xf   :  { %1264 = vmatpush1.bf16.msra.mxu0 %v3336_v14  ;;  %v3356_v28 = vld [vmem:[%s5052_s1 + $0x4] ss:$16 sps:$4 sm:$0xff]   ;;  %v3360_v30 = vld [vmem:[%s5052_s1] ss:$16 sps:$4 sm:$0xff]  }
  0x10   :  { %1305 = vmatpush1.bf16.msra.mxu1 %v3337_v15  ;;  %1265 = vmatprep.subr.bf16.mxu0 %v3338_v16  ;;  %v3358_v29 = vld [vmem:[%s5052_s1 + $0x204] ss:$16 sps:$4 sm:$0xff]   ;;  %v3361_v31 = vld [vmem:[%s5052_s1 + $0x200] ss:$16 sps:$4 sm:$0xff]   ;;  %v4118_v15 = vld [vmem:[%s5053_s0 + $0x18] ss:$0 sps:$4 sm:$0xff]  }
  0x11   :  { %1306 = vmatprep.subr.bf16.mxu1 %v3340_v17  ;;  %v3362_v32 = vld [vmem:[%s5052_s1 + $0x1e4] ss:$16 sps:$4 sm:$0xff]   ;;  %v3366_v34 = vld [vmem:[%s5052_s1 + $0x1e0] ss:$16 sps:$4 sm:$0xff]   ;;  %v3424_v16 = vld [vmem:[%s5052_s1 + $0xe8] ss:$16 sps:$4 sm:$0xff]  }
  0x12   :  { %v3364_v33 = vld [vmem:[%s5052_s1 + $0x3e4] ss:$16 sps:$4 sm:$0xff]   ;;  %v3367_v35 = vld [vmem:[%s5052_s1 + $0x3e0] ss:$16 sps:$4 sm:$0xff]  }
  0x13   :  { %1266 = vmatpush1.bf16.msra.mxu0 %v3342_v18  ;;  %v3368_v36 = vld [vmem:[%s5052_s1 + $0x1c4] ss:$16 sps:$4 sm:$0xff]   ;;  %v3372_v38 = vld [vmem:[%s5052_s1 + $0x1c0] ss:$16 sps:$4 sm:$0xff]   ;;  %v3432_v18 = vld [vmem:[%s5052_s1 + $0xcc] ss:$16 sps:$4 sm:$0xff]  }
  0x14   :  { %1307 = vmatpush1.bf16.msra.mxu1 %v3343_v19  ;;  %1267 = vmatprep.subr.bf16.mxu0 %v3344_v20  ;;  %v3370_v37 = vld [vmem:[%s5052_s1 + $0x3c4] ss:$16 sps:$4 sm:$0xff]   ;;  %v3373_v39 = vld [vmem:[%s5052_s1 + $0x3c0] ss:$16 sps:$4 sm:$0xff]   ;;  %v3430_v20 = vld [vmem:[%s5052_s1 + $0xc8] ss:$16 sps:$4 sm:$0xff]  }
  0x15   :  { %1308 = vmatprep.subr.bf16.mxu1 %v3346_v21  ;;  %v3374_v40 = vld [vmem:[%s5052_s1 + $0x1a4] ss:$16 sps:$4 sm:$0xff]   ;;  %v3378_v42 = vld [vmem:[%s5052_s1 + $0x1a0] ss:$16 sps:$4 sm:$0xff]  }
  0x16   :  { %v3376_v41 = vld [vmem:[%s5052_s1 + $0x3a4] ss:$16 sps:$4 sm:$0xff]   ;;  %v3379_v43 = vld [vmem:[%s5052_s1 + $0x3a0] ss:$16 sps:$4 sm:$0xff]  }
  0x17   :  { %1268 = vmatpush1.bf16.msra.mxu0 %v3348_v22  ;;  %v3380_v44 = vld [vmem:[%s5052_s1 + $0x184] ss:$16 sps:$4 sm:$0xff]   ;;  %v3384_v46 = vld [vmem:[%s5052_s1 + $0x180] ss:$16 sps:$4 sm:$0xff]   ;;  %v3438_v22 = vld [vmem:[%s5052_s1 + $0xac] ss:$16 sps:$4 sm:$0xff]  }
  0x18   :  { %1309 = vmatpush1.bf16.msra.mxu1 %v3349_v23  ;;  %1269 = vmatprep.subr.bf16.mxu0 %v3350_v24  ;;  %v3382_v45 = vld [vmem:[%s5052_s1 + $0x384] ss:$16 sps:$4 sm:$0xff]   ;;  %v3385_v48 = vld [vmem:[%s5052_s1 + $0x380] ss:$16 sps:$4 sm:$0xff]   ;;  %v3436_v24 = vld [vmem:[%s5052_s1 + $0xa8] ss:$16 sps:$4 sm:$0xff]  }
  0x19   :  { %1310 = vmatprep.subr.bf16.mxu1 %v3352_v25  ;;  %v27_v47 = vld [vmem:[%s5053_s0] sm:$0xff] }
  0x1a   :  { %v4027_v49 = vcombine.high %v27_v47, %v27_v47  ;;  %v3386_v51 = vld [vmem:[%s5052_s1 + $0x164] ss:$16 sps:$4 sm:$0xff]   ;;  %v3390_v54 = vld [vmem:[%s5052_s1 + $0x160] ss:$16 sps:$4 sm:$0xff]   ;;  %v4090_v6 = vcombine.low %v27_v47, %v27_v47 }
  0x1b   :  { %1270 = vmatpush1.bf16.msra.mxu0 %v3354_v26  ;;  %v3388_v53 = vld [vmem:[%s5052_s1 + $0x364] ss:$16 sps:$4 sm:$0xff]   ;;  %v3391_v55 = vld [vmem:[%s5052_s1 + $0x360] ss:$16 sps:$4 sm:$0xff]   ;;  %v3444_v26 = vld [vmem:[%s5052_s1 + $0x8c] ss:$16 sps:$4 sm:$0xff]  }
  0x1c   :  { %1311 = vmatpush1.bf16.msra.mxu1 %v3355_v27  ;;  %1271 = vmatprep.subr.bf16.mxu0 %v3356_v28  ;;  %v3392_v56 = vld [vmem:[%s5052_s1 + $0x144] ss:$16 sps:$4 sm:$0xff]   ;;  %v3396_v58 = vld [vmem:[%s5052_s1 + $0x140] ss:$16 sps:$4 sm:$0xff]   ;;  %v3442_v28 = vld [vmem:[%s5052_s1 + $0x88] ss:$16 sps:$4 sm:$0xff]  }
  0x1d   :  { %1312 = vmatprep.subr.bf16.mxu1 %v3358_v29  ;;  %1289 = vmatprep.mubr.bf16.mxu0 %v4027_v49  ;;  %v3394_v57 = vld [vmem:[%s5052_s1 + $0x344] ss:$16 sps:$4 sm:$0xff]   ;;  %v3397_v59 = vld [vmem:[%s5052_s1 + $0x340] ss:$16 sps:$4 sm:$0xff]  }
  0x1e   :  { %v3398_v60 = vld [vmem:[%s5052_s1 + $0x124] ss:$16 sps:$4 sm:$0xff]   ;;  %v3402_v62 = vld [vmem:[%s5052_s1 + $0x120] ss:$16 sps:$4 sm:$0xff]  }
  0x1f   :  { %1272 = vmatpush1.bf16.msra.mxu0 %v3360_v30  ;;  %v3400_v61 = vld [vmem:[%s5052_s1 + $0x324] ss:$16 sps:$4 sm:$0xff]   ;;  %v3403_v63 = vld [vmem:[%s5052_s1 + $0x320] ss:$16 sps:$4 sm:$0xff]   ;;  %v3450_v30 = vld [vmem:[%s5052_s1 + $0x6c] ss:$16 sps:$4 sm:$0xff]  }
  0x20   :  { %1313 = vmatpush1.bf16.msra.mxu1 %v3361_v31  ;;  %1273 = vmatprep.subr.bf16.mxu0 %v3362_v32  ;;  %v3404_v0 = vld [vmem:[%s5052_s1 + $0x104] ss:$16 sps:$4 sm:$0xff]   ;;  %v3408_v2 = vld [vmem:[%s5052_s1 + $0x100] ss:$16 sps:$4 sm:$0xff]  }
  0x21   :  { %1314 = vmatprep.subr.bf16.mxu1 %v3364_v33  ;;  %v3406_v1 = vld [vmem:[%s5052_s1 + $0x304] ss:$16 sps:$4 sm:$0xff]   ;;  %v3409_v3 = vld [vmem:[%s5052_s1 + $0x300] ss:$16 sps:$4 sm:$0xff]  }
  0x22   :  { %v3417_v4 = vld [vmem:[%s5052_s1 + $0x4e4] ss:$16 sps:$4 sm:$0xff]   ;;  %v3415_v8 = vld [vmem:[%s5052_s1 + $0x4e0] ss:$16 sps:$4 sm:$0xff]  }
  0x23   :  { %1274 = vmatpush2.bf16.msra.mxu0 %v3366_v34  ;;  %v3420_v5 = vld [vmem:[%s5052_s1 + $0x604] ss:$16 sps:$4 sm:$0xff]   ;;  %v3418_v9 = vld [vmem:[%s5052_s1 + $0x600] ss:$16 sps:$4 sm:$0xff]   ;;  %v3448_v34 = vld [vmem:[%s5052_s1 + $0x68] ss:$16 sps:$4 sm:$0xff]  }
  0x24   :  { %1315 = vmatpush2.bf16.msra.mxu1 %v3367_v35  ;;  %1275 = vmatprep.subr.bf16.mxu0 %v3368_v36  ;;  %v3423_v10 = vld [vmem:[%s5052_s1 + $0x4c4] ss:$16 sps:$4 sm:$0xff]   ;;  %v3421_v12 = vld [vmem:[%s5052_s1 + $0x4c0] ss:$16 sps:$4 sm:$0xff]   ;;  %v3456_v36 = vld [vmem:[%s5052_s1 + $0x4c] ss:$16 sps:$4 sm:$0xff]  }
  0x25   :  { %1316 = vmatprep.subr.bf16.mxu1 %v3370_v37  ;;  %v3429_v14 = vld [vmem:[%s5052_s1 + $0x4a4] ss:$16 sps:$4 sm:$0xff]   ;;  %v3427_v17 = vld [vmem:[%s5052_s1 + $0x4a0] ss:$16 sps:$4 sm:$0xff]  }
  0x26   :  { %v3435_v19 = vld [vmem:[%s5052_s1 + $0x484] ss:$16 sps:$4 sm:$0xff]   ;;  %v3433_v21 = vld [vmem:[%s5052_s1 + $0x480] ss:$16 sps:$4 sm:$0xff]  }
  0x27   :  { %1276 = vmatpush2.bf16.msra.mxu0 %v3372_v38  ;;  %v3441_v23 = vld [vmem:[%s5052_s1 + $0x464] ss:$16 sps:$4 sm:$0xff]   ;;  %v3439_v25 = vld [vmem:[%s5052_s1 + $0x460] ss:$16 sps:$4 sm:$0xff]   ;;  %v3454_v38 = vld [vmem:[%s5052_s1 + $0x48] ss:$16 sps:$4 sm:$0xff]  }
  0x28   :  { %1317 = vmatpush2.bf16.msra.mxu1 %v3373_v39  ;;  %1277 = vmatprep.subr.bf16.mxu0 %v3374_v40  ;;  %v3447_v27 = vld [vmem:[%s5052_s1 + $0x444] ss:$16 sps:$4 sm:$0xff]   ;;  %v3445_v29 = vld [vmem:[%s5052_s1 + $0x440] ss:$16 sps:$4 sm:$0xff]   ;;  %v3462_v40 = vld [vmem:[%s5052_s1 + $0x2c] ss:$16 sps:$4 sm:$0xff]  }
  0x29   :  { %1318 = vmatprep.subr.bf16.mxu1 %v3376_v41  ;;  %v3453_v31 = vld [vmem:[%s5052_s1 + $0x424] ss:$16 sps:$4 sm:$0xff]   ;;  %v3451_v35 = vld [vmem:[%s5052_s1 + $0x420] ss:$16 sps:$4 sm:$0xff]  }
  0x2a   :  { %v4174_v32 = vld [vmem:[%s5053_s0 + $0x10] sm:$0xff] }
  0x2b   :  { %1278 = vmatpush2.bf16.msra.mxu0 %v3378_v42  ;;  %v4178_v33 = vcombine.high %v4174_v32, %v4174_v32  ;;  %v3459_v37 = vld [vmem:[%s5052_s1 + $0x404] ss:$16 sps:$4 sm:$0xff]   ;;  %v3457_v39 = vld [vmem:[%s5052_s1 + $0x400] ss:$16 sps:$4 sm:$0xff]   ;;  %v3460_v42 = vld [vmem:[%s5052_s1 + $0x28] ss:$16 sps:$4 sm:$0xff]  }
  0x2c   :  { %1319 = vmatpush2.bf16.msra.mxu1 %v3379_v43  ;;  %1279 = vmatprep.subr.bf16.mxu0 %v3380_v44  ;;  %v3465_v41 = vld [vmem:[%s5052_s1 + $0x5e4] ss:$16 sps:$4 sm:$0xff]   ;;  %v3463_v43 = vld [vmem:[%s5052_s1 + $0x5e0] ss:$16 sps:$4 sm:$0xff]   ;;  %v3468_v44 = vld [vmem:[%s5052_s1 + $0xc] ss:$16 sps:$4 sm:$0xff]  }
  0x2d   :  { %1320 = vmatprep.subr.bf16.mxu1 %v3382_v45  ;;  %v3471_v45 = vld [vmem:[%s5052_s1 + $0x5c4] ss:$16 sps:$4 sm:$0xff]   ;;  %v3469_v47 = vld [vmem:[%s5052_s1 + $0x5c0] ss:$16 sps:$4 sm:$0xff]  }
  0x2f   :  { %1280 = vmatpush2.bf16.msra.mxu0 %v3384_v46  ;;  %v3466_v46 = vld [vmem:[%s5052_s1 + $0x8] ss:$16 sps:$4 sm:$0xff]  }
  0x30   :  { %1321 = vmatpush2.bf16.msra.mxu1 %v3385_v48  ;;  %1281 = vmatprep.subr.bf16.mxu0 %v3386_v51  ;;  %v3474_v48 = vld [vmem:[%s5052_s1 + $0x1ec] ss:$16 sps:$4 sm:$0xff]   ;;  %v3475_v51 = vld [vmem:[%s5052_s1 + $0x5a0] ss:$16 sps:$4 sm:$0xff]  }
  0x31   :  { %1322 = vmatprep.subr.bf16.mxu1 %v3388_v53  ;;  %v3480_v53 = vld [vmem:[%s5052_s1 + $0x1cc] ss:$16 sps:$4 sm:$0xff]  }
  0x33   :  { %1282 = vmatpush2.bf16.msra.mxu0 %v3390_v54  ;;  %v3483_v54 = vld [vmem:[%s5052_s1 + $0x584] ss:$16 sps:$4 sm:$0xff]  }
  0x34   :  { %1323 = vmatpush2.bf16.msra.mxu1 %v3391_v55  ;;  %1283 = vmatprep.subr.bf16.mxu0 %v3392_v56  ;;  %v3478_v55 = vld [vmem:[%s5052_s1 + $0x1c8] ss:$16 sps:$4 sm:$0xff]   ;;  %v3481_v56 = vld [vmem:[%s5052_s1 + $0x580] ss:$16 sps:$4 sm:$0xff]  }
  0x35   :  { %1324 = vmatprep.subr.bf16.mxu1 %v3394_v57  ;;  %v3486_v57 = vld [vmem:[%s5052_s1 + $0x1ac] ss:$16 sps:$4 sm:$0xff]  }
  0x37   :  { %1284 = vmatpush2.bf16.msra.mxu0 %v3396_v58  ;;  %v3489_v58 = vld [vmem:[%s5052_s1 + $0x564] ss:$16 sps:$4 sm:$0xff]  }
  0x38   :  { %1325 = vmatpush2.bf16.msra.mxu1 %v3397_v59  ;;  %1285 = vmatprep.subr.bf16.mxu0 %v3398_v60  ;;  %v3484_v59 = vld [vmem:[%s5052_s1 + $0x1a8] ss:$16 sps:$4 sm:$0xff]   ;;  %v3487_v60 = vld [vmem:[%s5052_s1 + $0x560] ss:$16 sps:$4 sm:$0xff]  }
  0x39   :  { %1326 = vmatprep.subr.bf16.mxu1 %v3400_v61  ;;  %v3492_v61 = vld [vmem:[%s5052_s1 + $0x18c] ss:$16 sps:$4 sm:$0xff]  }
  0x3b   :  { %1286 = vmatpush2.bf16.msra.mxu0 %v3402_v62  ;;  %v3495_v62 = vld [vmem:[%s5052_s1 + $0x544] ss:$16 sps:$4 sm:$0xff]  }
  0x3c   :  { %1327 = vmatpush2.bf16.msra.mxu1 %v3403_v63  ;;  %1287 = vmatprep.subr.bf16.mxu0 %v3404_v0  ;;  %v3490_v63 = vld [vmem:[%s5052_s1 + $0x188] ss:$16 sps:$4 sm:$0xff]   ;;  %v3493_v0 = vld [vmem:[%s5052_s1 + $0x540] ss:$16 sps:$4 sm:$0xff]  }
  0x3d   :  { %1328 = vmatprep.subr.bf16.mxu1 %v3406_v1  ;;  %v3498_v1 = vld [vmem:[%s5052_s1 + $0x16c] ss:$16 sps:$4 sm:$0xff]  }
  0x3f   :  { %1288 = vmatpush2.bf16.msra.mxu0 %v3408_v2  ;;  %v3501_v2 = vld [vmem:[%s5052_s1 + $0x524] ss:$16 sps:$4 sm:$0xff]  }
  0x40   :  { %1329 = vmatpush2.bf16.msra.mxu1 %v3409_v3  ;;  %1339 = vmatprep.subr.bf16.mxu0 %v3417_v4  ;;  %v3496_v3 = vld [vmem:[%s5052_s1 + $0x168] ss:$16 sps:$4 sm:$0xff]   ;;  %v3499_v4 = vld [vmem:[%s5052_s1 + $0x520] ss:$16 sps:$4 sm:$0xff]  }
  0x41   :  { %1394 = vmatprep.subr.bf16.mxu1 %v3420_v5  ;;  %v3504_v5 = vld [vmem:[%s5052_s1 + $0x14c] ss:$16 sps:$4 sm:$0xff]  }
  0x42   :  { %1290 = vmatmul.mubr.bf16.vlgmr.msra.gmra.mxu0 %v4090_v6 }
  0x43   :  { %1331 = vmatmul.mubr.bf16.vlgmr.msra.gmra.mxu1 %v4092_v7  ;;  %1340 = vmatpush1.bf16.msra.mxu0 %v3415_v8  ;;  %v3507_v8 = vld [vmem:[%s5052_s1 + $0x504] ss:$16 sps:$4 sm:$0xff]  }
  0x44   :  { %1395 = vmatpush1.bf16.msra.mxu1 %v3418_v9  ;;  %1341 = vmatprep.subr.bf16.mxu0 %v3423_v10  ;;  %v3502_v9 = vld [vmem:[%s5052_s1 + $0x148] ss:$16 sps:$4 sm:$0xff]   ;;  %v3505_v10 = vld [vmem:[%s5052_s1 + $0x500] ss:$16 sps:$4 sm:$0xff]  }
  0x45   :  { %1412 = vmatprep.mubr.bf16.mxu1 %v3839_v13  ;;  %1421 = vmatprep.subr.bf16.mxu1 %v3426_v11  ;;  %v3512_v11 = vld [vmem:[%s5052_s1 + $0x12c] ss:$16 sps:$4 sm:$0xff]  }
  0x46   :  { %1371 = vmatprep.mubr.bf16.mxu0 %v4178_v33 }
  0x47   :  { %1342 = vmatpush1.bf16.msra.mxu0 %v3421_v12  ;;  %v3515_v12 = vld [vmem:[%s5052_s1 + $0x2ec] ss:$16 sps:$4 sm:$0xff]  }
  0x48   :  { %1343 = vmatprep.subr.bf16.mxu0 %v3429_v14  ;;  %v4303_v14 = vcombine.low %v4174_v32, %v4174_v32  ;;  %v3542_v32 = vld [vmem:[%s5052_s1 + $0x48c] ss:$16 sps:$4 sm:$0xff]  }
  0x4b   :  { %3106 = vmatmul.mubr.msk.bf16.vlgmr.msra.gmra.mxu1 %vm1253_vm0, %v4118_v15  ;;  %1344 = vmatpush1.bf16.msra.mxu0 %v3427_v17  ;;  %v3513_v17 = vld [vmem:[%s5052_s1 + $0x2e8] ss:$16 sps:$4 sm:$0xff]  }
  0x4c   :  { %1422 = vmatpush1.bf16.msra.mxu1 %v3424_v16  ;;  %1345 = vmatprep.subr.bf16.mxu0 %v3435_v19  ;;  %v3510_v16 = vld [vmem:[%s5052_s1 + $0x128] ss:$16 sps:$4 sm:$0xff]   ;;  %v3521_v19 = vld [vmem:[%s5052_s1 + $0x2cc] ss:$16 sps:$4 sm:$0xff]  }
  0x4d   :  { %1423 = vmatprep.subr.bf16.mxu1 %v3432_v18  ;;  %1453 = vmatprep.mubr.bf16.mxu1 %v4027_v49  ;;  %v3477_v49 = vld [vmem:[%s5052_s1 + $0x5a4] ss:$16 sps:$4 sm:$0xff]   ;;  %v3518_v18 = vld [vmem:[%s5052_s1 + $0x10c] ss:$16 sps:$4 sm:$0xff]  }
  0x4f   :  { %1346 = vmatpush1.bf16.msra.mxu0 %v3433_v21  ;;  %v3519_v21 = vld [vmem:[%s5052_s1 + $0x2c8] ss:$16 sps:$4 sm:$0xff]  }
  0x50   :  { %1424 = vmatpush1.bf16.msra.mxu1 %v3430_v20  ;;  %1347 = vmatprep.subr.bf16.mxu0 %v3441_v23  ;;  %v3516_v20 = vld [vmem:[%s5052_s1 + $0x108] ss:$16 sps:$4 sm:$0xff]   ;;  %v3527_v23 = vld [vmem:[%s5052_s1 + $0x2ac] ss:$16 sps:$4 sm:$0xff]  }
  0x51   :  { %1425 = vmatprep.subr.bf16.mxu1 %v3438_v22  ;;  %v3524_v22 = vld [vmem:[%s5052_s1 + $0x4ec] ss:$16 sps:$4 sm:$0xff]  }
  0x53   :  { %1348 = vmatpush1.bf16.msra.mxu0 %v3439_v25  ;;  %v3525_v25 = vld [vmem:[%s5052_s1 + $0x2a8] ss:$16 sps:$4 sm:$0xff]  }
  0x54   :  { %1426 = vmatpush1.bf16.msra.mxu1 %v3436_v24  ;;  %1349 = vmatprep.subr.bf16.mxu0 %v3447_v27  ;;  %v3522_v24 = vld [vmem:[%s5052_s1 + $0x4e8] ss:$16 sps:$4 sm:$0xff]  }
  0x55   :  { %1427 = vmatprep.subr.bf16.mxu1 %v3444_v26  ;;  %v3530_v26 = vld [vmem:[%s5052_s1 + $0x4cc] ss:$16 sps:$4 sm:$0xff]   ;;  %v3528_v27 = vld [vmem:[%s5052_s1 + $0x4c8] ss:$16 sps:$4 sm:$0xff]  }
  0x57   :  { %1350 = vmatpush1.bf16.msra.mxu0 %v3445_v29  ;;  %v3536_v29 = vld [vmem:[%s5052_s1 + $0x4ac] ss:$16 sps:$4 sm:$0xff]  }
  0x58   :  { %1428 = vmatpush1.bf16.msra.mxu1 %v3442_v28  ;;  %1351 = vmatprep.subr.bf16.mxu0 %v3453_v31  ;;  %v3531_v28 = vld [vmem:[%s5052_s1 + $0x288] ss:$16 sps:$4 sm:$0xff]  }
  0x59   :  { %1429 = vmatprep.subr.bf16.mxu1 %v3450_v30  ;;  %v3534_v30 = vld [vmem:[%s5052_s1 + $0x4a8] ss:$16 sps:$4 sm:$0xff]  }
  0x5a   :  { %v3537_v31 = vld [vmem:[%s5052_s1 + $0x268] ss:$16 sps:$4 sm:$0xff]  }
  0x5b   :  { %1352 = vmatpush1.bf16.msra.mxu0 %v3451_v35  ;;  %v3540_v35 = vld [vmem:[%s5052_s1 + $0x488] ss:$16 sps:$4 sm:$0xff]  }
  0x5c   :  { %1430 = vmatpush1.bf16.msra.mxu1 %v3448_v34  ;;  %1353 = vmatprep.subr.bf16.mxu0 %v3459_v37  ;;  %v3545_v34 = vld [vmem:[%s5052_s1 + $0x24c] ss:$16 sps:$4 sm:$0xff]  }
  0x5d   :  { %1431 = vmatprep.subr.bf16.mxu1 %v3456_v36  ;;  %v3548_v36 = vld [vmem:[%s5052_s1 + $0x46c] ss:$16 sps:$4 sm:$0xff]  }
  0x5e   :  { %v3551_v37 = vld [vmem:[%s5052_s1 + $0x22c] ss:$16 sps:$4 sm:$0xff]  }
  0x5f   :  { %1354 = vmatpush1.bf16.msra.mxu0 %v3457_v39  ;;  %v3549_v39 = vld [vmem:[%s5052_s1 + $0x228] ss:$16 sps:$4 sm:$0xff]  }
  0x60   :  { %1432 = vmatpush1.bf16.msra.mxu1 %v3454_v38  ;;  %1355 = vmatprep.subr.bf16.mxu0 %v3465_v41  ;;  %v3546_v38 = vld [vmem:[%s5052_s1 + $0x468] ss:$16 sps:$4 sm:$0xff]   ;;  %v3557_v41 = vld [vmem:[%s5052_s1 + $0x20c] ss:$16 sps:$4 sm:$0xff]  }
  0x61   :  { %1433 = vmatprep.subr.bf16.mxu1 %v3462_v40  ;;  %v3554_v40 = vld [vmem:[%s5052_s1 + $0x44c] ss:$16 sps:$4 sm:$0xff]  }
  0x63   :  { %1356 = vmatpush2.bf16.msra.mxu0 %v3463_v43  ;;  %v3555_v43 = vld [vmem:[%s5052_s1 + $0x208] ss:$16 sps:$4 sm:$0xff]  }
  0x64   :  { %1434 = vmatpush1.bf16.msra.mxu1 %v3460_v42  ;;  %1357 = vmatprep.subr.bf16.mxu0 %v3471_v45  ;;  %v3552_v42 = vld [vmem:[%s5052_s1 + $0x448] ss:$16 sps:$4 sm:$0xff]   ;;  %v3563_v45 = vld [vmem:[%s5052_s1 + $0x3ec] ss:$16 sps:$4 sm:$0xff]  }
  0x65   :  { %1435 = vmatprep.subr.bf16.mxu1 %v3468_v44  ;;  %v3560_v44 = vld [vmem:[%s5052_s1 + $0x42c] ss:$16 sps:$4 sm:$0xff]  }
  0x67   :  { %1358 = vmatpush2.bf16.msra.mxu0 %v3469_v47  ;;  %v3561_v47 = vld [vmem:[%s5052_s1 + $0x3e8] ss:$16 sps:$4 sm:$0xff]  }
  0x68   :  { %1436 = vmatpush1.bf16.msra.mxu1 %v3466_v46  ;;  %1359 = vmatprep.subr.bf16.mxu0 %v3477_v49  ;;  %v3558_v46 = vld [vmem:[%s5052_s1 + $0x428] ss:$16 sps:$4 sm:$0xff]   ;;  %v3569_v49 = vld [vmem:[%s5052_s1 + $0x3cc] ss:$16 sps:$4 sm:$0xff]  }
  0x69   :  { %1437 = vmatprep.subr.bf16.mxu1 %v3474_v48  ;;  %v3566_v48 = vld [vmem:[%s5052_s1 + $0x40c] ss:$16 sps:$4 sm:$0xff]  }
  0x6b   :  { %1360 = vmatpush2.bf16.msra.mxu0 %v3475_v51  ;;  %v3567_v51 = vld [vmem:[%s5052_s1 + $0x3c8] ss:$16 sps:$4 sm:$0xff]  }
  0x6c   :  { %1438 = vmatpush2.bf16.msra.mxu1 %v3472_v50  ;;  %1361 = vmatprep.subr.bf16.mxu0 %v3483_v54  ;;  %v3564_v50 = vld [vmem:[%s5052_s1 + $0x408] ss:$16 sps:$4 sm:$0xff]   ;;  %v3575_v54 = vld [vmem:[%s5052_s1 + $0x3ac] ss:$16 sps:$4 sm:$0xff]  }
  0x6d   :  { %1439 = vmatprep.subr.bf16.mxu1 %v3480_v53  ;;  %v3572_v53 = vld [vmem:[%s5052_s1 + $0x5ec] ss:$16 sps:$4 sm:$0xff]  }
  0x6f   :  { %1362 = vmatpush2.bf16.msra.mxu0 %v3481_v56  ;;  %v3573_v56 = vld [vmem:[%s5052_s1 + $0x3a8] ss:$16 sps:$4 sm:$0xff]  }
  0x70   :  { %1440 = vmatpush2.bf16.msra.mxu1 %v3478_v55  ;;  %1363 = vmatprep.subr.bf16.mxu0 %v3489_v58  ;;  %v3570_v55 = vld [vmem:[%s5052_s1 + $0x5e8] ss:$16 sps:$4 sm:$0xff]   ;;  %v3581_v58 = vld [vmem:[%s5052_s1 + $0x38c] ss:$16 sps:$4 sm:$0xff]  }
  0x71   :  { %1441 = vmatprep.subr.bf16.mxu1 %v3486_v57  ;;  %v3578_v57 = vld [vmem:[%s5052_s1 + $0x5cc] ss:$16 sps:$4 sm:$0xff]  }
  0x73   :  { %1364 = vmatpush2.bf16.msra.mxu0 %v3487_v60  ;;  %v3579_v60 = vld [vmem:[%s5052_s1 + $0x388] ss:$16 sps:$4 sm:$0xff]  }
  0x74   :  { %1442 = vmatpush2.bf16.msra.mxu1 %v3484_v59  ;;  %1365 = vmatprep.subr.bf16.mxu0 %v3495_v62  ;;  %v3576_v59 = vld [vmem:[%s5052_s1 + $0x5c8] ss:$16 sps:$4 sm:$0xff]   ;;  %v3587_v62 = vld [vmem:[%s5052_s1 + $0x36c] ss:$16 sps:$4 sm:$0xff]  }
  0x75   :  { %1443 = vmatprep.subr.bf16.mxu1 %v3492_v61  ;;  %v3584_v61 = vld [vmem:[%s5052_s1 + $0x5ac] ss:$16 sps:$4 sm:$0xff]  }
  0x77   :  { %1366 = vmatpush2.bf16.msra.mxu0 %v3493_v0  ;;  %v3585_v0 = vld [vmem:[%s5052_s1 + $0x368] ss:$16 sps:$4 sm:$0xff]  }
  0x78   :  { %1444 = vmatpush2.bf16.msra.mxu1 %v3490_v63  ;;  %1367 = vmatprep.subr.bf16.mxu0 %v3501_v2  ;;  %v3582_v63 = vld [vmem:[%s5052_s1 + $0x5a8] ss:$16 sps:$4 sm:$0xff]   ;;  %v3593_v2 = vld [vmem:[%s5052_s1 + $0x34c] ss:$16 sps:$4 sm:$0xff]  }
  0x79   :  { %1445 = vmatprep.subr.bf16.mxu1 %v3498_v1  ;;  %v3590_v1 = vld [vmem:[%s5052_s1 + $0x58c] ss:$16 sps:$4 sm:$0xff]  }
  0x7b   :  { %1368 = vmatpush2.bf16.msra.mxu0 %v3499_v4  ;;  %v3591_v4 = vld [vmem:[%s5052_s1 + $0x348] ss:$16 sps:$4 sm:$0xff]  }
  0x7c   :  { %1446 = vmatpush2.bf16.msra.mxu1 %v3496_v3  ;;  %1369 = vmatprep.subr.bf16.mxu0 %v3507_v8  ;;  %v3588_v3 = vld [vmem:[%s5052_s1 + $0x588] ss:$16 sps:$4 sm:$0xff]   ;;  %v3599_v8 = vld [vmem:[%s5052_s1 + $0x32c] ss:$16 sps:$4 sm:$0xff]  }
  0x7d   :  { %1447 = vmatprep.subr.bf16.mxu1 %v3504_v5  ;;  %v3596_v5 = vld [vmem:[%s5052_s1 + $0x56c] ss:$16 sps:$4 sm:$0xff]  }
  0x7f   :  { %1370 = vmatpush2.bf16.msra.mxu0 %v3505_v10  ;;  %v3597_v10 = vld [vmem:[%s5052_s1 + $0x328] ss:$16 sps:$4 sm:$0xff]  }
  0x80   :  { %1448 = vmatpush2.bf16.msra.mxu1 %v3502_v9  ;;  %1462 = vmatprep.subr.bf16.mxu0 %v3515_v12  ;;  %v3594_v9 = vld [vmem:[%s5052_s1 + $0x568] ss:$16 sps:$4 sm:$0xff]   ;;  %v3605_v12 = vld [vmem:[%s5052_s1 + $0x30c] ss:$16 sps:$4 sm:$0xff]  }
  0x81   :  { %1449 = vmatprep.subr.bf16.mxu1 %v3512_v11  ;;  %v3602_v11 = vld [vmem:[%s5052_s1 + $0x54c] ss:$16 sps:$4 sm:$0xff]  }
  0x82   :  { %1372 = vmatmul.mubr.bf16.vlgmr.msra.gmra.mxu0 %v4303_v14 }
  0x83   :  { %1463 = vmatpush1.bf16.msra.mxu0 %v3513_v17  ;;  %1494 = vmatprep.mubr.bf16.mxu0 %v4035_v52  ;;  %v3533_v52 = vld [vmem:[%s5052_s1 + $0x28c] ss:$16 sps:$4 sm:$0xff]   ;;  %v3603_v17 = vld [vmem:[%s5052_s1 + $0x308] ss:$16 sps:$4 sm:$0xff]  }
  0x84   :  { %1450 = vmatpush2.bf16.msra.mxu1 %v3510_v16  ;;  %1464 = vmatprep.subr.bf16.mxu0 %v3521_v19  ;;  %v3600_v16 = vld [vmem:[%s5052_s1 + $0x548] ss:$16 sps:$4 sm:$0xff]   ;;  %v3611_v19 = vld [vmem:[%s5052_s1 + $0x60c] ss:$16 sps:$4 sm:$0xff]  }
  0x85   :  { %1451 = vmatprep.subr.bf16.mxu1 %v3518_v18  ;;  %v3608_v18 = vld [vmem:[%s5052_s1 + $0x52c] ss:$16 sps:$4 sm:$0xff]  }
  0x87   :  { %1465 = vmatpush1.bf16.msra.mxu0 %v3519_v21  ;;  %v3609_v21 = vld [vmem:[%s5052_s1 + $0x608] ss:$16 sps:$4 sm:$0xff]  }
  0x88   :  { %1452 = vmatpush2.bf16.msra.mxu1 %v3516_v20  ;;  %1466 = vmatprep.subr.bf16.mxu0 %v3527_v23  ;;  %v3606_v20 = vld [vmem:[%s5052_s1 + $0x528] ss:$16 sps:$4 sm:$0xff]   ;;  %v3617_v23 = vld [vmem:[%s5054_s3 + $0xe4] ss:$16 sps:$4 sm:$0xff]  }
  0x89   :  { %1503 = vmatprep.subr.bf16.mxu1 %v3524_v22  ;;  %v3614_v22 = vld [vmem:[%s5052_s1 + $0x50c] ss:$16 sps:$4 sm:$0xff]  }
  0x8b   :  { %1454 = vmatmul.mubr.bf16.vlgmr.msra.gmra.mxu1 %v4090_v6  ;;  %1467 = vmatpush1.bf16.msra.mxu0 %v3525_v25  ;;  %v3539_v6 = vld [vmem:[%s5052_s1 + $0x26c] ss:$16 sps:$4 sm:$0xff]   ;;  %v3615_v25 = vld [vmem:[%s5054_s3 + $0xe0] ss:$16 sps:$4 sm:$0xff]  }
  0x8c   :  { %1504 = vmatpush1.bf16.msra.mxu1 %v3522_v24  ;;  %1468 = vmatprep.subr.bf16.mxu0 %v3533_v52  ;;  %v3612_v24 = vld [vmem:[%s5052_s1 + $0x508] ss:$16 sps:$4 sm:$0xff]   ;;  %v3621_v52 = vld [vmem:[%s5054_s3 + $0xa0] ss:$16 sps:$4 sm:$0xff]  }
  0x8d   :  { %1505 = vmatprep.subr.bf16.mxu1 %v3530_v26  ;;  %1535 = vmatprep.mubr.bf16.mxu1 %v4178_v33  ;;  %v3543_v33 = vld [vmem:[%s5052_s1 + $0x248] ss:$16 sps:$4 sm:$0xff]   ;;  %v3620_v26 = vld [vmem:[%s5054_s3 + $0xc4] ss:$16 sps:$4 sm:$0xff]  }
  0x8f   :  { %1469 = vmatpush1.bf16.msra.mxu0 %v3531_v28  ;;  %v3671_v28 = vld [vmem:[%s5054_s3 + $0x2e4] ss:$16 sps:$4 sm:$0xff]  }
  0x90   :  { %1506 = vmatpush1.bf16.msra.mxu1 %v3528_v27  ;;  %1470 = vmatprep.subr.bf16.mxu0 %v3539_v6  ;;  %v3669_v27 = vld [vmem:[%s5054_s3 + $0x2e0] ss:$16 sps:$4 sm:$0xff]  }
  0x91   :  { %1507 = vmatprep.subr.bf16.mxu1 %v3536_v29  ;;  %v3629_v29 = vld [vmem:[%s5054_s3 + $0x64] ss:$16 sps:$4 sm:$0xff]   ;;  %v3627_v6 = vld [vmem:[%s5054_s3 + $0x60] ss:$16 sps:$4 sm:$0xff]  }
  0x93   :  { %1471 = vmatpush1.bf16.msra.mxu0 %v3537_v31  ;;  %v3677_v31 = vld [vmem:[%s5054_s3 + $0x2c4] ss:$16 sps:$4 sm:$0xff]  }
  0x94   :  { %1508 = vmatpush1.bf16.msra.mxu1 %v3534_v30  ;;  %1472 = vmatprep.subr.bf16.mxu0 %v3545_v34  ;;  %v3675_v30 = vld [vmem:[%s5054_s3 + $0x2c0] ss:$16 sps:$4 sm:$0xff]  }
  0x95   :  { %1509 = vmatprep.subr.bf16.mxu1 %v3542_v32  ;;  %v3632_v32 = vld [vmem:[%s5054_s3 + $0x44] ss:$16 sps:$4 sm:$0xff]   ;;  %v3630_v34 = vld [vmem:[%s5054_s3 + $0x40] ss:$16 sps:$4 sm:$0xff]  }
  0x97   :  { %1473 = vmatpush1.bf16.msra.mxu0 %v3543_v33  ;;  %v3683_v33 = vld [vmem:[%s5054_s3 + $0x2a4] ss:$16 sps:$4 sm:$0xff]  }
  0x98   :  { %1510 = vmatpush1.bf16.msra.mxu1 %v3540_v35  ;;  %1474 = vmatprep.subr.bf16.mxu0 %v3551_v37  ;;  %v3681_v35 = vld [vmem:[%s5054_s3 + $0x2a0] ss:$16 sps:$4 sm:$0xff]  }
  0x99   :  { %1511 = vmatprep.subr.bf16.mxu1 %v3548_v36  ;;  %v3635_v36 = vld [vmem:[%s5054_s3 + $0x24] ss:$16 sps:$4 sm:$0xff]   ;;  %v3633_v37 = vld [vmem:[%s5054_s3 + $0x20] ss:$16 sps:$4 sm:$0xff]  }
  0x9b   :  { %1475 = vmatpush1.bf16.msra.mxu0 %v3549_v39  ;;  %v3689_v39 = vld [vmem:[%s5054_s3 + $0x284] ss:$16 sps:$4 sm:$0xff]  }
  0x9c   :  { %1512 = vmatpush1.bf16.msra.mxu1 %v3546_v38  ;;  %1476 = vmatprep.subr.bf16.mxu0 %v3557_v41  ;;  %v3687_v38 = vld [vmem:[%s5054_s3 + $0x280] ss:$16 sps:$4 sm:$0xff]  }
  0x9d   :  { %1513 = vmatprep.subr.bf16.mxu1 %v3554_v40  ;;  %v3638_v40 = vld [vmem:[%s5054_s3 + $0x4] ss:$16 sps:$4 sm:$0xff]   ;;  %v3636_v41 = vld [vmem:[%s5054_s3] ss:$16 sps:$4 sm:$0xff]  }
  0x9f   :  { %1477 = vmatpush1.bf16.msra.mxu0 %v3555_v43  ;;  %v3695_v43 = vld [vmem:[%s5054_s3 + $0x264] ss:$16 sps:$4 sm:$0xff]  }
  0xa0   :  { %1514 = vmatpush1.bf16.msra.mxu1 %v3552_v42  ;;  %1478 = vmatprep.subr.bf16.mxu0 %v3563_v45  ;;  %v3693_v42 = vld [vmem:[%s5054_s3 + $0x260] ss:$16 sps:$4 sm:$0xff]  }
  0xa1   :  { %1515 = vmatprep.subr.bf16.mxu1 %v3560_v44  ;;  %v3641_v44 = vld [vmem:[%s5054_s3 + $0x1e4] ss:$16 sps:$4 sm:$0xff]   ;;  %v3639_v45 = vld [vmem:[%s5054_s3 + $0x1e0] ss:$16 sps:$4 sm:$0xff]  }
  0xa3   :  { %1479 = vmatpush2.bf16.msra.mxu0 %v3561_v47  ;;  %v3701_v47 = vld [vmem:[%s5054_s3 + $0x244] ss:$16 sps:$4 sm:$0xff]  }
  0xa4   :  { %1516 = vmatpush1.bf16.msra.mxu1 %v3558_v46  ;;  %1480 = vmatprep.subr.bf16.mxu0 %v3569_v49  ;;  %v3699_v46 = vld [vmem:[%s5054_s3 + $0x240] ss:$16 sps:$4 sm:$0xff]  }
  0xa5   :  { %1517 = vmatprep.subr.bf16.mxu1 %v3566_v48  ;;  %v3644_v48 = vld [vmem:[%s5054_s3 + $0x1c4] ss:$16 sps:$4 sm:$0xff]   ;;  %v3642_v49 = vld [vmem:[%s5054_s3 + $0x1c0] ss:$16 sps:$4 sm:$0xff]  }
  0xa7   :  { %1481 = vmatpush2.bf16.msra.mxu0 %v3567_v51  ;;  %v3707_v51 = vld [vmem:[%s5054_s3 + $0x224] ss:$16 sps:$4 sm:$0xff]  }
  0xa8   :  { %1518 = vmatpush1.bf16.msra.mxu1 %v3564_v50  ;;  %1482 = vmatprep.subr.bf16.mxu0 %v3575_v54  ;;  %v3705_v50 = vld [vmem:[%s5054_s3 + $0x220] ss:$16 sps:$4 sm:$0xff]  }
  0xa9   :  { %1519 = vmatprep.subr.bf16.mxu1 %v3572_v53  ;;  %v3647_v53 = vld [vmem:[%s5054_s3 + $0x1a4] ss:$16 sps:$4 sm:$0xff]   ;;  %v3645_v54 = vld [vmem:[%s5054_s3 + $0x1a0] ss:$16 sps:$4 sm:$0xff]  }
  0xab   :  { %1483 = vmatpush2.bf16.msra.mxu0 %v3573_v56  ;;  %v3713_v56 = vld [vmem:[%s5054_s3 + $0x204] ss:$16 sps:$4 sm:$0xff]  }
  0xac   :  { %1520 = vmatpush2.bf16.msra.mxu1 %v3570_v55  ;;  %1484 = vmatprep.subr.bf16.mxu0 %v3581_v58  ;;  %v3711_v55 = vld [vmem:[%s5054_s3 + $0x200] ss:$16 sps:$4 sm:$0xff]  }
  0xad   :  { %1521 = vmatprep.subr.bf16.mxu1 %v3578_v57  ;;  %v3650_v57 = vld [vmem:[%s5054_s3 + $0x184] ss:$16 sps:$4 sm:$0xff]   ;;  %v3648_v58 = vld [vmem:[%s5054_s3 + $0x180] ss:$16 sps:$4 sm:$0xff]  }
  0xaf   :  { %1485 = vmatpush2.bf16.msra.mxu0 %v3579_v60  ;;  %v3719_v60 = vld [vmem:[%s5054_s3 + $0x3e4] ss:$16 sps:$4 sm:$0xff]  }
  0xb0   :  { %1522 = vmatpush2.bf16.msra.mxu1 %v3576_v59  ;;  %1486 = vmatprep.subr.bf16.mxu0 %v3587_v62  ;;  %v3717_v59 = vld [vmem:[%s5054_s3 + $0x3e0] ss:$16 sps:$4 sm:$0xff]  }
  0xb1   :  { %1523 = vmatprep.subr.bf16.mxu1 %v3584_v61  ;;  %v3653_v61 = vld [vmem:[%s5054_s3 + $0x164] ss:$16 sps:$4 sm:$0xff]   ;;  %v3651_v62 = vld [vmem:[%s5054_s3 + $0x160] ss:$16 sps:$4 sm:$0xff]  }
  0xb3   :  { %1487 = vmatpush2.bf16.msra.mxu0 %v3585_v0  ;;  %v3725_v0 = vld [vmem:[%s5054_s3 + $0x3c4] ss:$16 sps:$4 sm:$0xff]  }
  0xb4   :  { %1524 = vmatpush2.bf16.msra.mxu1 %v3582_v63  ;;  %1488 = vmatprep.subr.bf16.mxu0 %v3593_v2  ;;  %v3723_v63 = vld [vmem:[%s5054_s3 + $0x3c0] ss:$16 sps:$4 sm:$0xff]  }
  0xb5   :  { %1525 = vmatprep.subr.bf16.mxu1 %v3590_v1  ;;  %v3656_v1 = vld [vmem:[%s5054_s3 + $0x144] ss:$16 sps:$4 sm:$0xff]   ;;  %v3654_v2 = vld [vmem:[%s5054_s3 + $0x140] ss:$16 sps:$4 sm:$0xff]  }
  0xb7   :  { %1489 = vmatpush2.bf16.msra.mxu0 %v3591_v4  ;;  %v3731_v4 = vld [vmem:[%s5054_s3 + $0x3a4] ss:$16 sps:$4 sm:$0xff]  }
  0xb8   :  { %1526 = vmatpush2.bf16.msra.mxu1 %v3588_v3  ;;  %1490 = vmatprep.subr.bf16.mxu0 %v3599_v8  ;;  %v3729_v3 = vld [vmem:[%s5054_s3 + $0x3a0] ss:$16 sps:$4 sm:$0xff]  }
  0xb9   :  { %1527 = vmatprep.subr.bf16.mxu1 %v3596_v5  ;;  %v3659_v5 = vld [vmem:[%s5054_s3 + $0x124] ss:$16 sps:$4 sm:$0xff]   ;;  %v3657_v8 = vld [vmem:[%s5054_s3 + $0x120] ss:$16 sps:$4 sm:$0xff]  }
  0xbb   :  { %1491 = vmatpush2.bf16.msra.mxu0 %v3597_v10  ;;  %v3737_v10 = vld [vmem:[%s5054_s3 + $0x384] ss:$16 sps:$4 sm:$0xff]  }
  0xbc   :  { %1528 = vmatpush2.bf16.msra.mxu1 %v3594_v9  ;;  %1492 = vmatprep.subr.bf16.mxu0 %v3605_v12  ;;  %v3735_v9 = vld [vmem:[%s5054_s3 + $0x380] ss:$16 sps:$4 sm:$0xff]  }
  0xbd   :  { %1529 = vmatprep.subr.bf16.mxu1 %v3602_v11  ;;  %v3662_v11 = vld [vmem:[%s5054_s3 + $0x104] ss:$16 sps:$4 sm:$0xff]  }
  0xbf   :  { %1493 = vmatpush2.bf16.msra.mxu0 %v3603_v17  ;;  %v3660_v17 = vld [vmem:[%s5054_s3 + $0x100] ss:$16 sps:$4 sm:$0xff]  }
  0xc0   :  { %1530 = vmatpush2.bf16.msra.mxu1 %v3600_v16  ;;  %1558 = vmatprep.subr.bf16.mxu0 %v3611_v19 }
  0xc1   :  { %1531 = vmatprep.subr.bf16.mxu1 %v3608_v18  ;;  %v3743_v18 = vld [vmem:[%s5054_s3 + $0x364] ss:$16 sps:$4 sm:$0xff]  }
  0xc2   :  { %1495 = vmatmul.mubr.bf16.vlgmr.msra.gmra.mxu0 %v4092_v7  ;;  %v3618_v7 = vld [vmem:[%s5054_s3 + $0xc0] ss:$16 sps:$4 sm:$0xff]  }
  0xc3   :  { %1559 = vmatpush1.bf16.msra.mxu0 %v3609_v21  ;;  %1576 = vmatprep.mubr.bf16.mxu0 %v3839_v13  ;;  %v3623_v13 = vld [vmem:[%s5054_s3 + $0xa4] ss:$16 sps:$4 sm:$0xff]   ;;  %v3665_v21 = vld [vmem:[%s5054_s3 + $0xec] ss:$16 sps:$4 sm:$0xff]  }
  0xc4   :  { %1532 = vmatpush2.bf16.msra.mxu1 %v3606_v20  ;;  %2383 = vmatprep.subr.bf16.mxu0 %v3617_v23 }
  0xc5   :  { %1533 = vmatprep.subr.bf16.mxu1 %v3614_v22  ;;  %v3741_v22 = vld [vmem:[%s5054_s3 + $0x360] ss:$16 sps:$4 sm:$0xff]  }
  0xc8   :  { %1534 = vmatpush2.bf16.msra.mxu1 %v3612_v24 }
  0xc9   :  { %2424 = vmatprep.subr.bf16.mxu1 %v3671_v28 }
  0xca   :  { %3107 = vmatmul.mubr.msk.bf16.vlgmr.msra.gmra.mxu0 %vm1253_vm0, %v4118_v15  ;;  %v3626_v15 = vld [vmem:[%s5054_s3 + $0x84] ss:$16 sps:$4 sm:$0xff]  }
  0xcb   :  { %1536 = vmatmul.mubr.bf16.vlgmr.msra.gmra.mxu1 %v4303_v14  ;;  %2384 = vmatpush1.bf16.msra.mxu0 %v3615_v25  ;;  %v3624_v14 = vld [vmem:[%s5054_s3 + $0x80] ss:$16 sps:$4 sm:$0xff]   ;;  %v3749_v25 = vld [vmem:[%s5054_s3 + $0x344] ss:$16 sps:$4 sm:$0xff]  }
  0xcc   :  { %2385 = vmatprep.subr.bf16.mxu0 %v3620_v26  ;;  %2425 = vmatpush1.bf16.msra.mxu1 %v3669_v27  ;;  %v3753_v27 = vld [vmem:[%s5054_s3 + $0x320] ss:$16 sps:$4 sm:$0xff]  }
  0xcd   :  { %2426 = vmatprep.subr.bf16.mxu1 %v3677_v31  ;;  %v3761_v31 = vld [vmem:[%s5054_s3 + $0x2ec] ss:$16 sps:$4 sm:$0xff]  }
  0xcf   :  { %2386 = vmatpush1.bf16.msra.mxu0 %v3618_v7 }
  0xd0   :  { %2387 = vmatprep.subr.bf16.mxu0 %v3623_v13  ;;  %2427 = vmatpush1.bf16.msra.mxu1 %v3675_v30  ;;  %v3747_v13 = vld [vmem:[%s5054_s3 + $0x340] ss:$16 sps:$4 sm:$0xff]  }
  0xd1   :  { %2428 = vmatprep.subr.bf16.mxu1 %v3683_v33  ;;  %v3756_v30 = vld [vmem:[%s5054_s3 + $0x300] ss:$16 sps:$4 sm:$0xff]  }
  0xd2   :  { %v4722_v33 = vld [vmem:[%s5055_s2] sm:$0xf] }
  0xd3   :  { %2388 = vmatpush1.bf16.msra.mxu0 %v3621_v52 }
  0xd4   :  { %2389 = vmatprep.subr.bf16.mxu0 %v3626_v15  ;;  %2429 = vmatpush1.bf16.msra.mxu1 %v3681_v35  ;;  %v3755_v15 = vld [vmem:[%s5054_s3 + $0x324] ss:$16 sps:$4 sm:$0xff]  }
  0xd5   :  { %2430 = vmatprep.subr.bf16.mxu1 %v3689_v39 }
  0xd7   :  { %2390 = vmatpush1.bf16.msra.mxu0 %v3624_v14 }
  0xd8   :  { %2391 = vmatprep.subr.bf16.mxu0 %v3629_v29  ;;  %2431 = vmatpush1.bf16.msra.mxu1 %v3687_v38  ;;  %v3758_v29 = vld [vmem:[%s5054_s3 + $0x304] ss:$16 sps:$4 sm:$0xff]  }
  0xd9   :  { %2432 = vmatprep.subr.bf16.mxu1 %v3695_v43 }
  0xdb   :  { %2392 = vmatpush1.bf16.msra.mxu0 %v3627_v6 }
  0xdc   :  { %2393 = vmatprep.subr.bf16.mxu0 %v3632_v32  ;;  %2433 = vmatpush1.bf16.msra.mxu1 %v3693_v42  ;;  %v229_v32 = vlaneseq }
  0xdd   :  { %2434 = vmatprep.subr.bf16.mxu1 %v3701_v47 }
  0xdf   :  { %2394 = vmatpush1.bf16.msra.mxu0 %v3630_v34  ;;  %v4716_v34 = vshrl.u32 %v229_v32, 7 }
  0xe0   :  { %2395 = vmatprep.subr.bf16.mxu0 %v3635_v36  ;;  %2435 = vmatpush1.bf16.msra.mxu1 %v3699_v46 }
  0xe1   :  { %2436 = vmatprep.subr.bf16.mxu1 %v3707_v51  ;;  %v231_v35 = vsub.s32 0, %v4716_v34  ;;  %v235_v36 = vsub.s32 1, %v4716_v34 }
  0xe3   :  { %2396 = vmatpush1.bf16.msra.mxu0 %v3633_v37  ;;  %v232_v37 = vrot.slane %v4722_v33, %v231_v35  ;;  %v236_v38 = vrot.slane %v4722_v33, %v235_v36 }
  0xe4   :  { %2397 = vmatprep.subr.bf16.mxu0 %v3638_v40  ;;  %2437 = vmatpush1.bf16.msra.mxu1 %v3705_v50 }
  0xe5   :  { %2438 = vmatprep.subr.bf16.mxu1 %v3713_v56  ;;  %v3663_v56 = vld [vmem:[%s5054_s3 + $0xe8] ss:$16 sps:$4 sm:$0xff]  }
  0xe7   :  { %2398 = vmatpush1.bf16.msra.mxu0 %v3636_v41 }
  0xe8   :  { %2399 = vmatprep.subr.bf16.mxu0 %v3641_v44  ;;  %2439 = vmatpush1.bf16.msra.mxu1 %v3711_v55 }
  0xe9   :  { %2440 = vmatprep.subr.bf16.mxu1 %v3719_v60 }
  0xeb   :  { %2400 = vmatpush2.bf16.msra.mxu0 %v3639_v45 }
  0xec   :  { %2401 = vmatprep.subr.bf16.mxu0 %v3644_v48  ;;  %2441 = vmatpush2.bf16.msra.mxu1 %v3717_v59  ;;  %v3668_v59 = vld [vmem:[%s5054_s3 + $0xcc] ss:$16 sps:$4 sm:$0xff]  }
  0xed   :  { %2442 = vmatprep.subr.bf16.mxu1 %v3725_v0  ;;  %v3672_v0 = vld [vmem:[%s5054_s3 + $0xa8] ss:$16 sps:$4 sm:$0xff]  }
  0xef   :  { %2402 = vmatpush2.bf16.msra.mxu0 %v3642_v49 }
  0xf0   :  { %2403 = vmatprep.subr.bf16.mxu0 %v3647_v53  ;;  %2443 = vmatpush2.bf16.msra.mxu1 %v3723_v63  ;;  %v3674_v63 = vld [vmem:[%s5054_s3 + $0xac] ss:$16 sps:$4 sm:$0xff]  }
  0xf1   :  { %2444 = vmatprep.subr.bf16.mxu1 %v3731_v4  ;;  %v3684_v4 = vld [vmem:[%s5054_s3 + $0x68] ss:$16 sps:$4 sm:$0xff]  }
  0xf3   :  { %2404 = vmatpush2.bf16.msra.mxu0 %v3645_v54 }
  0xf4   :  { %2405 = vmatprep.subr.bf16.mxu0 %v3650_v57  ;;  %2445 = vmatpush2.bf16.msra.mxu1 %v3729_v3  ;;  %v3686_v3 = vld [vmem:[%s5054_s3 + $0x6c] ss:$16 sps:$4 sm:$0xff]  }
  0xf5   :  { %2446 = vmatprep.subr.bf16.mxu1 %v3737_v10  ;;  %v3696_v10 = vld [vmem:[%s5054_s3 + $0x28] ss:$16 sps:$4 sm:$0xff]  }
  0xf7   :  { %2406 = vmatpush2.bf16.msra.mxu0 %v3648_v58 }
  0xf8   :  { %2407 = vmatprep.subr.bf16.mxu0 %v3653_v61  ;;  %2447 = vmatpush2.bf16.msra.mxu1 %v3735_v9  ;;  %v3666_v61 = vld [vmem:[%s5054_s3 + $0xc8] ss:$16 sps:$4 sm:$0xff]   ;;  %v3698_v9 = vld [vmem:[%s5054_s3 + $0x2c] ss:$16 sps:$4 sm:$0xff]  }
  0xf9   :  { %2448 = vmatprep.subr.bf16.mxu1 %v3743_v18  ;;  %v3716_v18 = vld [vmem:[%s5054_s3 + $0x1cc] ss:$16 sps:$4 sm:$0xff]  }
  0xfb   :  { %2408 = vmatpush2.bf16.msra.mxu0 %v3651_v62 }
  0xfc   :  { %2409 = vmatprep.subr.bf16.mxu0 %v3656_v1  ;;  %2449 = vmatpush2.bf16.msra.mxu1 %v3741_v22  ;;  %v3680_v1 = vld [vmem:[%s5054_s3 + $0x8c] ss:$16 sps:$4 sm:$0xff]  }
  0xfd   :  { %2450 = vmatprep.subr.bf16.mxu1 %v3749_v25  ;;  %v3728_v22 = vld [vmem:[%s5054_s3 + $0x18c] ss:$16 sps:$4 sm:$0xff]   ;;  %v3732_v25 = vld [vmem:[%s5054_s3 + $0x168] ss:$16 sps:$4 sm:$0xff]  }
  0xff   :  { %2410 = vmatpush2.bf16.msra.mxu0 %v3654_v2  ;;  %v3678_v2 = vld [vmem:[%s5054_s3 + $0x88] ss:$16 sps:$4 sm:$0xff]  }
 0x100   :  { %2411 = vmatprep.subr.bf16.mxu0 %v3659_v5  ;;  %2451 = vmatpush2.bf16.msra.mxu1 %v3747_v13  ;;  %v3692_v5 = vld [vmem:[%s5054_s3 + $0x4c] ss:$16 sps:$4 sm:$0xff]   ;;  %v3738_v13 = vld [vmem:[%s5054_s3 + $0x148] ss:$16 sps:$4 sm:$0xff]  }
 0x101   :  { %2452 = vmatprep.subr.bf16.mxu1 %v3755_v15  ;;  %v243_v15 = vsub.s32 3, %v4716_v34 }
 0x102   :  { %v1291_v12 = vpop.f32.mrf.mxu0 }
 0x103   :  { %v1332_v16 = vpop.f32.mrf.mxu1  ;;  %2412 = vmatpush2.bf16.msra.mxu0 %v3657_v8  ;;  %v1292_v39 = vadd.f32 %v1291_v12, %v232_v37  ;;  %v3690_v8 = vld [vmem:[%s5054_s3 + $0x48] ss:$16 sps:$4 sm:$0xff]  }
 0x104   :  { %v1293_v19 = vpop.f32.mrf.mxu0  ;;  %2413 = vmatprep.subr.bf16.mxu0 %v3662_v11  ;;  %2453 = vmatpush2.bf16.msra.mxu1 %v3753_v27  ;;  %v3704_v11 = vld [vmem:[%s5054_s3 + $0xc] ss:$16 sps:$4 sm:$0xff]   ;;  %v3702_v12 = vld [vmem:[%s5054_s3 + $0x8] ss:$16 sps:$4 sm:$0xff]  }
 0x105   :  { %v1334_v20 = vpop.f32.mrf.mxu1  ;;  %2454 = vmatprep.subr.bf16.mxu1 %v3758_v29  ;;  %v1294_v40 = vadd.f32 %v1293_v19, %v236_v38  ;;  %v1333_v41 = vadd.f32 %v1332_v16, %v1292_v39  ;;  %v3710_v16 = vld [vmem:[%s5054_s3 + $0x1ec] ss:$16 sps:$4 sm:$0xff]   ;;  %v3714_v19 = vld [vmem:[%s5054_s3 + $0x1c8] ss:$16 sps:$4 sm:$0xff]  }
 0x106   :  { %v1295_v23 = vpop.f32.mrf.mxu0  ;;  %v3750_v37 = vld [vmem:[%s5054_s3 + $0x108] ss:$16 sps:$4 sm:$0xff]  }
 0x107   :  { %v1336_v24 = vpop.f32.mrf.mxu1  ;;  %2414 = vmatpush2.bf16.msra.mxu0 %v3660_v17  ;;  %v1335_v43 = vadd.f32 %v1334_v20, %v1294_v40  ;;  %v3708_v17 = vld [vmem:[%s5054_s3 + $0x1e8] ss:$16 sps:$4 sm:$0xff]   ;;  %v3722_v20 = vld [vmem:[%s5054_s3 + $0x1ac] ss:$16 sps:$4 sm:$0xff]  }
 0x108   :  { %v1296_v26 = vpop.f32.mrf.mxu0  ;;  %2465 = vmatprep.subr.bf16.mxu0 %v3665_v21  ;;  %2455 = vmatpush2.bf16.msra.mxu1 %v3756_v30  ;;  %v3720_v21 = vld [vmem:[%s5054_s3 + $0x1a8] ss:$16 sps:$4 sm:$0xff]   ;;  %v3734_v24 = vld [vmem:[%s5054_s3 + $0x16c] ss:$16 sps:$4 sm:$0xff]   ;;  %v244_v30 = vrot.slane %v4722_v33, %v243_v15 }
 0x109   :  { %v1337_v7 = vpop.f32.mrf.mxu1  ;;  %2506 = vmatprep.subr.bf16.mxu1 %v3761_v31  ;;  %v3726_v23 = vld [vmem:[%s5054_s3 + $0x188] ss:$16 sps:$4 sm:$0xff]   ;;  %v3740_v26 = vld [vmem:[%s5054_s3 + $0x14c] ss:$16 sps:$4 sm:$0xff]  }
 0x10a   :  { %v239_v7 = vsub.s32 2, %v4716_v34 }
 0x10b   :  { %v1414_v52 = vpop.f32.mrf.mxu1 }
 0x10c   :  { %v240_v27 = vrot.slane %v4722_v33, %v239_v7 }
 0x10d   :  { %v1416_v14 = vpop.f32.mrf.mxu1 }
 0x10f   :  { %v1418_v28 = vpop.f32.mrf.mxu1 }
 0x110   :  { %v3744_v28 = vld [vmem:[%s5054_s3 + $0x128] ss:$16 sps:$4 sm:$0xff]  }
 0x111   :  { %v1419_v6 = vpop.f32.mrf.mxu1 }
 0x112   :  { %v3752_v6 = vld [vmem:[%s5054_s3 + $0x10c] ss:$16 sps:$4 sm:$0xff]  }
 0x142   :  { %v1373_v42 = vpop.f32.mrf.mxu0 }
 0x143   :  { %v1374_v44 = vadd.f32 %v1373_v42, %v1333_v41 }
 0x144   :  { %v1375_v45 = vpop.f32.mrf.mxu0 }
 0x145   :  { %v1415_v46 = vadd.f32 %v1414_v52, %v1374_v44  ;;  %v1376_v47 = vadd.f32 %v1375_v45, %v1335_v43  ;;  %v3746_v52 = vld [vmem:[%s5054_s3 + $0x12c] ss:$16 sps:$4 sm:$0xff]  }
 0x146   :  { %v1377_v48 = vpop.f32.mrf.mxu0 }
 0x147   :  { %v1417_v49 = vadd.f32 %v1416_v14, %v1376_v47  ;;  %v1585_v50 = vmax.f32 %v1415_v46, 0.0 }
 0x148   :  { %v1378_v51 = vpop.f32.mrf.mxu0 }
 0x149   :  { %v1586_v53 = vmax.f32 %v1417_v49, 0.0  ;;  %v4736_v57 = vpack.c.bf16 %v1585_v50, %v1585_v50 }
 0x14b   :  { %v4731_v54 = vpop.f32.mrf.mxu1  ;;  %v1590_v55 = vpack.c.bf16 %v1586_v53, %v1586_v53 }
 0x14c   :  { %v1456_v32 = vadd.f32 %v4731_v54, %v240_v27  ;;  %v3797_v27 = vld [vmem:[%s5054_s3 + $0x36c] ss:$16 sps:$4 sm:$0xff]  }
 0x14d   :  { %v4738_v58 = vpop.f32.mrf.mxu1  ;;  %2415 = vmatprep.mubr.bf16.mxu0 %v1590_v55 }
 0x14e   :  { %2416 = vmatmul.mubr.bf16.vlgmr.msra.gmra.mxu0 %v4736_v57  ;;  %v1458_v39 = vadd.f32 %v4738_v58, %v244_v30  ;;  %v3759_v58 = vld [vmem:[%s5054_s3 + $0x2e8] ss:$16 sps:$4 sm:$0xff]   ;;  %v3803_v30 = vld [vmem:[%s5054_s3 + $0x32c] ss:$16 sps:$4 sm:$0xff]  }
 0x14f   :  { %v1459_v60 = vpop.f32.mrf.mxu1  ;;  %2466 = vmatpush1.bf16.msra.mxu0 %v3663_v56  ;;  %2497 = vmatprep.mubr.bf16.mxu0 %v1590_v55 }
 0x150   :  { %2467 = vmatprep.subr.bf16.mxu0 %v3668_v59  ;;  %v3764_v60 = vld [vmem:[%s5054_s3 + $0x2cc] ss:$16 sps:$4 sm:$0xff]  }
 0x151   :  { %v1460_v62 = vpop.f32.mrf.mxu1 }
 0x152   :  { %v3808_v62 = vld [vmem:[%s5056_s5 + $0x38] sm:$0xff]  }
 0x153   :  { %2468 = vmatpush1.bf16.msra.mxu0 %v3666_v61  ;;  %v3807_v61 = vld [vmem:[%s5056_s5 + $0x78] sm:$0xff]  }
 0x154   :  { %2469 = vmatprep.subr.bf16.mxu0 %v3674_v63  ;;  %v3809_v63 = vld [vmem:[%s5056_s5 + $0x70] sm:$0xff]  }
 0x157   :  { %2470 = vmatpush1.bf16.msra.mxu0 %v3672_v0  ;;  %v3767_v0 = vld [vmem:[%s5054_s3 + $0x2ac] ss:$16 sps:$4 sm:$0xff]  }
 0x158   :  { %2471 = vmatprep.subr.bf16.mxu0 %v3680_v1  ;;  %v3765_v1 = vld [vmem:[%s5054_s3 + $0x2a8] ss:$16 sps:$4 sm:$0xff]  }
 0x15b   :  { %2472 = vmatpush1.bf16.msra.mxu0 %v3678_v2  ;;  %v3810_v2 = vld [vmem:[%s5056_s5 + $0x30] sm:$0xff]  }
 0x15c   :  { %2473 = vmatprep.subr.bf16.mxu0 %v3686_v3  ;;  %v3770_v3 = vld [vmem:[%s5054_s3 + $0x28c] ss:$16 sps:$4 sm:$0xff]  }
 0x15f   :  { %2474 = vmatpush1.bf16.msra.mxu0 %v3684_v4  ;;  %v3811_v4 = vld [vmem:[%s5056_s5 + $0x68] sm:$0xff]  }
 0x160   :  { %2475 = vmatprep.subr.bf16.mxu0 %v3692_v5  ;;  %v3812_v5 = vld [vmem:[%s5056_s5 + $0x28] sm:$0xff]  }
 0x163   :  { %2476 = vmatpush1.bf16.msra.mxu0 %v3690_v8  ;;  %v3813_v8 = vld [vmem:[%s5056_s5 + $0x60] sm:$0xff]  }
 0x164   :  { %2477 = vmatprep.subr.bf16.mxu0 %v3698_v9  ;;  %v3768_v9 = vld [vmem:[%s5054_s3 + $0x288] ss:$16 sps:$4 sm:$0xff]  }
 0x167   :  { %2478 = vmatpush1.bf16.msra.mxu0 %v3696_v10  ;;  %v3773_v10 = vld [vmem:[%s5054_s3 + $0x26c] ss:$16 sps:$4 sm:$0xff]  }
 0x168   :  { %2479 = vmatprep.subr.bf16.mxu0 %v3704_v11  ;;  %v3814_v11 = vld [vmem:[%s5056_s5 + $0x20] sm:$0xff]  }
 0x16b   :  { %2480 = vmatpush1.bf16.msra.mxu0 %v3702_v12  ;;  %v3771_v12 = vld [vmem:[%s5054_s3 + $0x268] ss:$16 sps:$4 sm:$0xff]  }
 0x16c   :  { %2481 = vmatprep.subr.bf16.mxu0 %v3710_v16  ;;  %v3776_v16 = vld [vmem:[%s5054_s3 + $0x24c] ss:$16 sps:$4 sm:$0xff]  }
 0x16f   :  { %2482 = vmatpush2.bf16.msra.mxu0 %v3708_v17  ;;  %v3774_v17 = vld [vmem:[%s5054_s3 + $0x248] ss:$16 sps:$4 sm:$0xff]  }
 0x170   :  { %2483 = vmatprep.subr.bf16.mxu0 %v3716_v18  ;;  %v3779_v18 = vld [vmem:[%s5054_s3 + $0x22c] ss:$16 sps:$4 sm:$0xff]  }
 0x173   :  { %2484 = vmatpush2.bf16.msra.mxu0 %v3714_v19  ;;  %v3777_v19 = vld [vmem:[%s5054_s3 + $0x228] ss:$16 sps:$4 sm:$0xff]  }
 0x174   :  { %2485 = vmatprep.subr.bf16.mxu0 %v3722_v20  ;;  %v3782_v20 = vld [vmem:[%s5054_s3 + $0x20c] ss:$16 sps:$4 sm:$0xff]  }
 0x177   :  { %2486 = vmatpush2.bf16.msra.mxu0 %v3720_v21  ;;  %v3780_v21 = vld [vmem:[%s5054_s3 + $0x208] ss:$16 sps:$4 sm:$0xff]  }
 0x178   :  { %2487 = vmatprep.subr.bf16.mxu0 %v3728_v22  ;;  %v3785_v22 = vld [vmem:[%s5054_s3 + $0x3ec] ss:$16 sps:$4 sm:$0xff]  }
 0x17b   :  { %2488 = vmatpush2.bf16.msra.mxu0 %v3726_v23  ;;  %v3783_v23 = vld [vmem:[%s5054_s3 + $0x3e8] ss:$16 sps:$4 sm:$0xff]  }
 0x17c   :  { %2489 = vmatprep.subr.bf16.mxu0 %v3734_v24  ;;  %v3788_v24 = vld [vmem:[%s5054_s3 + $0x3cc] ss:$16 sps:$4 sm:$0xff]  }
 0x17f   :  { %2490 = vmatpush2.bf16.msra.mxu0 %v3732_v25  ;;  %v3786_v25 = vld [vmem:[%s5054_s3 + $0x3c8] ss:$16 sps:$4 sm:$0xff]  }
 0x180   :  { %2491 = vmatprep.subr.bf16.mxu0 %v3740_v26  ;;  %v3791_v26 = vld [vmem:[%s5054_s3 + $0x3ac] ss:$16 sps:$4 sm:$0xff]  }
 0x182   :  { %v1496_v14 = vpop.f32.mrf.mxu0 }
 0x183   :  { %2492 = vmatpush2.bf16.msra.mxu0 %v3738_v13  ;;  %v1497_v40 = vadd.f32 %v1496_v14, %v1456_v32  ;;  %v3789_v13 = vld [vmem:[%s5054_s3 + $0x3a8] ss:$16 sps:$4 sm:$0xff]   ;;  %v3806_v32 = vld [vmem:[%s5054_s3 + $0x30c] ss:$16 sps:$4 sm:$0xff]  }
 0x184   :  { %v1498_v29 = vpop.f32.mrf.mxu0  ;;  %2493 = vmatprep.subr.bf16.mxu0 %v3746_v52  ;;  %v3794_v52 = vld [vmem:[%s5054_s3 + $0x38c] ss:$16 sps:$4 sm:$0xff]   ;;  %v3792_v14 = vld [vmem:[%s5054_s3 + $0x388] ss:$16 sps:$4 sm:$0xff]  }
 0x185   :  { %v1499_v43 = vadd.f32 %v1498_v29, %v1458_v39  ;;  %v3800_v29 = vld [vmem:[%s5054_s3 + $0x34c] ss:$16 sps:$4 sm:$0xff]  }
 0x186   :  { %v1500_v31 = vpop.f32.mrf.mxu0  ;;  %v3816_v39 = vld [vmem:[%s5056_s5 + $0x18] sm:$0xff]  }
 0x187   :  { %2494 = vmatpush2.bf16.msra.mxu0 %v3744_v28  ;;  %v3795_v28 = vld [vmem:[%s5054_s3 + $0x368] ss:$16 sps:$4 sm:$0xff]  }
 0x188   :  { %v1501_v38 = vpop.f32.mrf.mxu0  ;;  %2495 = vmatprep.subr.bf16.mxu0 %v3752_v6  ;;  %v3798_v6 = vld [vmem:[%s5054_s3 + $0x348] ss:$16 sps:$4 sm:$0xff]  }
 0x189   :  { %v3801_v31 = vld [vmem:[%s5054_s3 + $0x328] ss:$16 sps:$4 sm:$0xff]  }
 0x18a   :  { %v1578_v42 = vpop.f32.mrf.mxu0  ;;  %v3815_v38 = vld [vmem:[%s5056_s5 + $0x58] sm:$0xff]  }
 0x18b   :  { %v1537_v41 = vpop.f32.mrf.mxu1  ;;  %2496 = vmatpush2.bf16.msra.mxu0 %v3750_v37  ;;  %v3804_v37 = vld [vmem:[%s5054_s3 + $0x308] ss:$16 sps:$4 sm:$0xff]  }
 0x18c   :  { %v1538_v44 = vadd.f32 %v1537_v41, %v1497_v40  ;;  %v1580_v33 = vpop.f32.mrf.mxu0  ;;  %3269 = vmatprep.subr.bf16.mxu0 %v3807_v61  ;;  %v3817_v40 = vld [vmem:[%s5056_s5 + $0x50] sm:$0xff]  }
 0x18d   :  { %v1539_v45 = vpop.f32.mrf.mxu1  ;;  %v3818_v41 = vld [vmem:[%s5056_s5 + $0x10] sm:$0xff]  }
 0x18e   :  { %v1579_v46 = vadd.f32 %v1578_v42, %v1538_v44  ;;  %v1540_v47 = vadd.f32 %v1539_v45, %v1499_v43  ;;  %2498 = vmatmul.mubr.bf16.vlgmr.msra.gmra.mxu0 %v4736_v57  ;;  %v1582_v49 = vpop.f32.mrf.mxu0  ;;  %v3762_v57 = vld [vmem:[%s5054_s3 + $0x2c8] ss:$16 sps:$4 sm:$0xff]   ;;  %v3821_v44 = vld [vmem:[%s5056_s5 + $0x40] sm:$0xff]  }
 0x18f   :  { %v1541_v48 = vpop.f32.mrf.mxu1  ;;  %3270 = vmatpush3.bf16.msra.mxu0 %v3808_v62  ;;  %v3819_v42 = vld [vmem:[%s5056_s5 + $0x48] sm:$0xff]   ;;  %v3822_v45 = vld [vmem:[%s5056_s5] sm:$0xff]  }
 0x190   :  { %v1581_v50 = vadd.f32 %v1580_v33, %v1540_v47  ;;  %v1587_v51 = vmax.f32 %v1579_v46, 0.0  ;;  %v1583_v54 = vpop.f32.mrf.mxu0  ;;  %3271 = vmatprep.subr.bf16.mxu0 %v3809_v63  ;;  %v3820_v43 = vld [vmem:[%s5056_s5 + $0x8] sm:$0xff]   ;;  %v3823_v33 = vld [vmem:[%s5056_s5 + $0xf8] sm:$0xff]   ;;  %v3825_v47 = vld [vmem:[%s5056_s5 + $0xf0] sm:$0xff]  }
 0x191   :  { %v1542_v53 = vpop.f32.mrf.mxu1  ;;  %v3824_v46 = vld [vmem:[%s5056_s5 + $0xb8] sm:$0xff]   ;;  %v3826_v48 = vld [vmem:[%s5056_s5 + $0xb0] sm:$0xff]   ;;  %v3827_v49 = vld [vmem:[%s5056_s5 + $0xe8] sm:$0xff]  }
 0x192   :  { %v1588_v55 = vmax.f32 %v1581_v50, 0.0  ;;  %v4845_v59 = vpack.c.bf16 %v1587_v51, %v1587_v51  ;;  %v3828_v50 = vld [vmem:[%s5056_s5 + $0xa8] sm:$0xff]   ;;  %v3829_v51 = vld [vmem:[%s5056_s5 + $0xe0] sm:$0xff]   ;;  %v3831_v54 = vld [vmem:[%s5056_s5 + $0xd8] sm:$0xff]  }
 0x193   :  { %3272 = vmatpush3.bf16.msra.mxu0 %v3810_v2  ;;  %v3830_v53 = vld [vmem:[%s5056_s5 + $0xa0] sm:$0xff]   ;;  %v3835_v62 = vld [vmem:[%s5056_s5 + $0xc8] sm:$0xff]  }
 0x194   :  { %v1592_v56 = vpack.c.bf16 %v1588_v55, %v1588_v55  ;;  %3273 = vmatprep.subr.bf16.mxu0 %v3811_v4  ;;  %v3832_v55 = vld [vmem:[%s5056_s5 + $0x98] sm:$0xff]   ;;  %v3836_v63 = vld [vmem:[%s5056_s5 + $0x88] sm:$0xff]   ;;  %v1721_v2 = vld [vmem:[%s5057_s4] sm:$0xf] }
 0x196   :  { %2456 = vmatprep.mubr.bf16.mxu1 %v1592_v56 }
 0x197   :  { %2457 = vmatmul.mubr.bf16.vlgmr.msra.gmra.mxu1 %v4845_v59  ;;  %3274 = vmatpush3.bf16.msra.mxu0 %v3812_v5  ;;  %v1726_v5 = vrot.slane %v1721_v2, %v231_v35  ;;  %v1734_v35 = vrot.slane %v1721_v2, %v239_v7 }
 0x198   :  { %2507 = vmatpush1.bf16.msra.mxu1 %v3759_v58  ;;  %2538 = vmatprep.mubr.bf16.mxu1 %v1592_v56  ;;  %v3833_v56 = vld [vmem:[%s5056_s5 + $0xd0] sm:$0xff]  }
 0x199   :  { %2508 = vmatprep.subr.bf16.mxu1 %v3764_v60  ;;  %3275 = vmatprep.subr.bf16.mxu0 %v3813_v8  ;;  %v3834_v58 = vld [vmem:[%s5056_s5 + $0x90] sm:$0xff]  }
 0x19b   :  { %3276 = vmatpush3.bf16.msra.mxu0 %v3814_v11 }
 0x19c   :  { %2509 = vmatpush1.bf16.msra.mxu1 %v3762_v57  ;;  %3277 = vmatprep.subr.bf16.mxu0 %v3815_v38 }
 0x19d   :  { %2510 = vmatprep.subr.bf16.mxu1 %v3767_v0  ;;  %v3837_v0 = vld [vmem:[%s5056_s5 + $0xc0] sm:$0xff]  }
 0x19f   :  { %3278 = vmatpush3.bf16.msra.mxu0 %v3816_v39 }
 0x1a0   :  { %2511 = vmatpush1.bf16.msra.mxu1 %v3765_v1  ;;  %3279 = vmatprep.subr.bf16.mxu0 %v3817_v40  ;;  %v3838_v1 = vld [vmem:[%s5056_s5 + $0x80] sm:$0xff]  }
 0x1a1   :  { %2512 = vmatprep.subr.bf16.mxu1 %v3770_v3 }
 0x1a3   :  { %3280 = vmatpush3.bf16.msra.mxu0 %v3818_v41 }
 0x1a4   :  { %2513 = vmatpush1.bf16.msra.mxu1 %v3768_v9  ;;  %3281 = vmatprep.subr.bf16.mxu0 %v3819_v42  ;;  %v1730_v9 = vrot.slane %v1721_v2, %v235_v36  ;;  %v1738_v36 = vrot.slane %v1721_v2, %v243_v15  ;;  %v3236_v15 = vld [vmem:[%s5058_s6] ss:$0 sm:$0xff] }
 0x1a5   :  { %2514 = vmatprep.subr.bf16.mxu1 %v3773_v10 }
 0x1a7   :  { %3282 = vmatpush3.bf16.msra.mxu0 %v3820_v43 }
 0x1a8   :  { %2515 = vmatpush1.bf16.msra.mxu1 %v3771_v12  ;;  %3283 = vmatprep.subr.bf16.mxu0 %v3821_v44 }
 0x1a9   :  { %2516 = vmatprep.subr.bf16.mxu1 %v3776_v16 }
 0x1ab   :  { %3284 = vmatpush3.bf16.msra.mxu0 %v3822_v45 }
 0x1ac   :  { %2517 = vmatpush1.bf16.msra.mxu1 %v3774_v17 }
 0x1ad   :  { %2518 = vmatprep.subr.bf16.mxu1 %v3779_v18 }
 0x1b0   :  { %2519 = vmatpush1.bf16.msra.mxu1 %v3777_v19 }
 0x1b1   :  { %2520 = vmatprep.subr.bf16.mxu1 %v3782_v20 }
 0x1b4   :  { %2521 = vmatpush1.bf16.msra.mxu1 %v3780_v21 }
 0x1b5   :  { %2522 = vmatprep.subr.bf16.mxu1 %v3785_v22 }
 0x1b8   :  { %2523 = vmatpush2.bf16.msra.mxu1 %v3783_v23 }
 0x1b9   :  { %2524 = vmatprep.subr.bf16.mxu1 %v3788_v24 }
 0x1bc   :  { %2525 = vmatpush2.bf16.msra.mxu1 %v3786_v25 }
 0x1bd   :  { %2526 = vmatprep.subr.bf16.mxu1 %v3791_v26 }
 0x1c0   :  { %2527 = vmatpush2.bf16.msra.mxu1 %v3789_v13 }
 0x1c1   :  { %2528 = vmatprep.subr.bf16.mxu1 %v3794_v52 }
 0x1c4   :  { %2529 = vmatpush2.bf16.msra.mxu1 %v3792_v14 }
 0x1c5   :  { %2530 = vmatprep.subr.bf16.mxu1 %v3797_v27 }
 0x1c8   :  { %2531 = vmatpush2.bf16.msra.mxu1 %v3795_v28 }
 0x1c9   :  { %2532 = vmatprep.subr.bf16.mxu1 %v3800_v29 }
 0x1cc   :  { %2533 = vmatpush2.bf16.msra.mxu1 %v3798_v6 }
 0x1cd   :  { %2534 = vmatprep.subr.bf16.mxu1 %v3803_v30 }
 0x1d0   :  { %2535 = vmatpush2.bf16.msra.mxu1 %v3801_v31 }
 0x1d1   :  { %2536 = vmatprep.subr.bf16.mxu1 %v3806_v32 }
 0x1d4   :  { %2537 = vmatpush2.bf16.msra.mxu1 %v3804_v37 }
 0x1d5   :  { %3291 = vmatprep.subr.bf16.mxu1 %v3823_v33 }
 0x1d7   :  { %2539 = vmatmul.mubr.bf16.vlgmr.msra.gmra.mxu1 %v4845_v59 }
 0x1d8   :  { %3292 = vmatpush3.bf16.msra.mxu1 %v3824_v46 }
 0x1d9   :  { %3293 = vmatprep.subr.bf16.mxu1 %v3825_v47 }
 0x1dc   :  { %3294 = vmatpush3.bf16.msra.mxu1 %v3826_v48 }
 0x1dd   :  { %3295 = vmatprep.subr.bf16.mxu1 %v3827_v49 }
 0x1e0   :  { %3296 = vmatpush3.bf16.msra.mxu1 %v3828_v50 }
 0x1e1   :  { %3297 = vmatprep.subr.bf16.mxu1 %v3829_v51 }
 0x1e4   :  { %3298 = vmatpush3.bf16.msra.mxu1 %v3830_v53 }
 0x1e5   :  { %3299 = vmatprep.subr.bf16.mxu1 %v3831_v54 }
 0x1e8   :  { %3300 = vmatpush3.bf16.msra.mxu1 %v3832_v55 }
 0x1e9   :  { %3301 = vmatprep.subr.bf16.mxu1 %v3833_v56 }
 0x1ec   :  { %3302 = vmatpush3.bf16.msra.mxu1 %v3834_v58 }
 0x1ed   :  { %3303 = vmatprep.subr.bf16.mxu1 %v3835_v62 }
 0x1f0   :  { %3304 = vmatpush3.bf16.msra.mxu1 %v3836_v63 }
 0x1f1   :  { %3305 = vmatprep.subr.bf16.mxu1 %v3837_v0 }
 0x1f4   :  { %3306 = vmatpush3.bf16.msra.mxu1 %v3838_v1 }
 0x20e   :  { %v2417_v59 = vpop.f32.mrf.mxu0 }
 0x20f   :  { %v2418_v11 = vadd.f32 %v2417_v59, %v1726_v5 }
 0x210   :  { %v2419_v60 = vpop.f32.mrf.mxu0 }
 0x211   :  { %v2420_v16 = vadd.f32 %v2419_v60, %v1730_v9 }
 0x212   :  { %v2421_v57 = vpop.f32.mrf.mxu0 }
 0x214   :  { %v2422_v61 = vpop.f32.mrf.mxu0 }
 0x24e   :  { %v2499_v3 = vpop.f32.mrf.mxu0 }
 0x24f   :  { %v2500_v26 = vadd.f32 %v2499_v3, %v1734_v35 }
 0x250   :  { %v2501_v4 = vpop.f32.mrf.mxu0 }
 0x251   :  { %v2502_v52 = vadd.f32 %v2501_v4, %v1738_v36 }
 0x252   :  { %v2503_v8 = vpop.f32.mrf.mxu0 }
 0x254   :  { %v2504_v10 = vpop.f32.mrf.mxu0 }
 0x257   :  { %v2458_v12 = vpop.f32.mrf.mxu1 }
 0x258   :  { %v2459_v17 = vadd.f32 %v2458_v12, %v2418_v11 }
 0x259   :  { %v2460_v18 = vpop.f32.mrf.mxu1 }
 0x25a   :  { %v2461_v19 = vadd.f32 %v2460_v18, %v2420_v16  ;;  %v2547_v20 = vmax.f32 %v2459_v17, 0.0 }
 0x25b   :  { %v2462_v21 = vpop.f32.mrf.mxu1 }
 0x25c   :  { %v2548_v22 = vmax.f32 %v2461_v19, 0.0  ;;  %v2551_v25 = vpack.c.bf16 %v2547_v20, %v2547_v20 }
 0x25d   :  { %v2463_v23 = vpop.f32.mrf.mxu1 }
 0x25e   :  { %v2552_v24 = vpack.c.bf16 %v2548_v22, %v2548_v22 }
 0x260   :  { %2850 = vmatprep.mubr.bf16.mxu0 %v2552_v24 }
 0x261   :  { %2851 = vmatmul.mubr.bf16.vlgmr.msra.gmra.mxu0 %v2551_v25 }
 0x297   :  { %v2540_v13 = vpop.f32.mrf.mxu1 }
 0x298   :  { %v2541_v14 = vadd.f32 %v2540_v13, %v2500_v26 }
 0x299   :  { %v2542_v27 = vpop.f32.mrf.mxu1 }
 0x29a   :  { %v2543_v28 = vadd.f32 %v2542_v27, %v2502_v52  ;;  %v2549_v29 = vmax.f32 %v2541_v14, 0.0 }
 0x29b   :  { %v2544_v6 = vpop.f32.mrf.mxu1 }
 0x29c   :  { %v2550_v30 = vmax.f32 %v2543_v28, 0.0  ;;  %v2553_v37 = vpack.c.bf16 %v2549_v29, %v2549_v29 }
 0x29d   :  { %v2545_v31 = vpop.f32.mrf.mxu1 }
 0x29e   :  { %v2554_v32 = vpack.c.bf16 %v2550_v30, %v2550_v30 }
 0x2a0   :  { %2890 = vmatprep.mubr.bf16.mxu1 %v2554_v32 }
 0x2a1   :  { %2891 = vmatmul.mubr.bf16.vlgmr.msra.gmra.mxu1 %v2553_v37 }
 0x321   :  { %v3285_v38 = vpop.f32.mrf.mxu0 }
 0x323   :  { %v3286_v39 = vpop.f32.mrf.mxu0 }
 0x324   :  { %v3287_v34 = vadd.f32 %v3286_v39, %v3285_v38 }
 0x325   :  { %v3288_v7 = vpop.f32.mrf.mxu0 }
 0x326   :  { %v2853_v43 = vadd.f32 %v3287_v34, %v3236_v15 }
 0x327   :  { %v3289_v40 = vpop.f32.mrf.mxu0 }
 0x361   :  { %v3307_v41 = vpop.f32.mrf.mxu1 }
 0x363   :  { %v3308_v42 = vpop.f32.mrf.mxu1 }
 0x364   :  { %v3309_v44 = vadd.f32 %v3308_v42, %v3307_v41 }
 0x365   :  { %v3310_v45 = vpop.f32.mrf.mxu1 }
 0x366   :  { %v2893_v33 = vadd.f32 %v3309_v44, %v2853_v43 }
 0x367   :  { %v3311_v46 = vpop.f32.mrf.mxu1 }
 0x368   :  { %2898 = vst [vmem:[%s5059_s7] sm:$0xff] %v2893_v33 }

</bundles_post_ra>
